<compile_context>
chip_gen: v7x
topology: tpu7x:2x2x1
jax: 0.10.0
libtpu: 0.0.40
codegen_flags: <defaults>
</compile_context>

<pallas_src>
import jax
import jax.numpy as jnp
from jax.experimental import pallas as pl
from jax.experimental.pallas import tpu as pltpu

ALIGN = 16  # bf16 sublane packing; keep row tiles 16-aligned


def _round_up(x, m):
    return (x + m - 1) // m * m


def _cdiv(a, b):
    return -(-a // b)


# ----------------------------------------------------------------------------
# Pallas kernel: fused neighbour embedding + LSTMCell + hidden2pool projection.
# ----------------------------------------------------------------------------
def _nn_lstm_kernel(x_ref, h_ref, c_ref,
                    weblk_ref, be_ref,
                    wcomb_ref, bg_ref,
                    wo_ref, bo_ref,
                    out_ref, h_out_ref, c_out_ref):
    H = c_ref.shape[1]
    c = c_ref[...]                       # f32
    h_bf = h_ref[...]                    # bf16 (streamed as bf16)

    # Neighbour embedding: all n Linear(4->E)+ReLU slots fused into one
    # block-diagonal matmul (K = n*4 = 16) + a single ReLU.
    emb = jnp.dot(x_ref[...].astype(jnp.bfloat16), weblk_ref[...],
                  preferred_element_type=jnp.float32) + be_ref[...]
    emb = jnp.maximum(emb, 0.0)

    # Single fused LHS [h | emb] against the combined [WhhT ; WihT] weight.
    # h occupies lanes 0..H-1 (vreg aligned), emb lands at lane offset H.
    hx = jnp.concatenate([h_bf, emb.astype(jnp.bfloat16)], axis=1)  # (tm, H+nE)

    # One MXU matmul per gate (N = H = 256), nonlinearity applied immediately
    # so the full (tm, 4H) f32 gates tensor is never live.
    def gate_pre(g):
        return (jnp.dot(hx, wcomb_ref[:, g * H:(g + 1) * H],
                        preferred_element_type=jnp.float32)
                + bg_ref[:, g * H:(g + 1) * H])

    i_g = jax.nn.sigmoid(gate_pre(0))          # input gate
    g_g = jnp.tanh(gate_pre(2))                # cell candidate
    ig = i_g * g_g
    f_g = jax.nn.sigmoid(gate_pre(1))          # forget gate
    c_new = f_g * c + ig
    o_g = jax.nn.sigmoid(gate_pre(3))          # output gate
    h_new = o_g * jnp.tanh(c_new)

    c_out_ref[...] = c_new
    h_out_ref[...] = h_new
    # hidden2pool projection, emitted directly at out_dim lanes.
    out_ref[...] = jnp.dot(h_new.astype(jnp.bfloat16), wo_ref[...],
                           preferred_element_type=jnp.float32) + bo_ref[...]


def _pick_tiles(BN, tm_max):
    bn_al = _round_up(max(BN, ALIGN), ALIGN)
    num_tiles = max(_cdiv(bn_al, tm_max), 1)
    if BN >= 2 * ALIGN:
        # Keep >= 2 programs so the "parallel" axis shards across v7x's 2 TCs.
        num_tiles = max(num_tiles, 2)
    tm = _round_up(_cdiv(bn_al, num_tiles), ALIGN)
    num_tiles = _cdiv(bn_al, tm)
    return tm, tm * num_tiles, num_tiles


def nn_lstm_pallas(x_flat, h, c, kp, tm_max=512):
    """x_flat: (BN, n*4) f32; h, c: (BN, H) f32; kp: kernel-ready params."""
    BN, H = h.shape
    in_feat = x_flat.shape[1]
    out_dim = kp["WoT"].shape[1]

    tm, bn_pad, num_tiles = _pick_tiles(BN, tm_max)

    h_bf = h.astype(jnp.bfloat16)        # only ever used as bf16 MXU LHS
    if bn_pad != BN:
        pad = [(0, bn_pad - BN), (0, 0)]
        x_flat = jnp.pad(x_flat, pad)
        h_bf = jnp.pad(h_bf, pad)
        c = jnp.pad(c, pad)

    def row(cols):
        return pl.BlockSpec((tm, cols), lambda i: (i, 0))

    def const(arr):
        # Weights/biases: full-array block, same block every grid step -> stays
        # resident in VMEM across the whole grid.
        # TODO(synk): could add pipeline_mode=pl.Buffered(1) to single-buffer
        # these constants; skipped since VMEM is not a constraint here.
        return pl.BlockSpec(arr.shape, lambda i: (0, 0))

    out, h_new, c_new = pl.pallas_call(
        _nn_lstm_kernel,
        out_shape=(jax.ShapeDtypeStruct((bn_pad, out_dim), jnp.float32),
                   jax.ShapeDtypeStruct((bn_pad, H), jnp.float32),
                   jax.ShapeDtypeStruct((bn_pad, H), jnp.float32)),
        grid_spec=pltpu.PrefetchScalarGridSpec(
            num_scalar_prefetch=0,
            grid=(num_tiles,),
            in_specs=[row(in_feat), row(H), row(H),
                      const(kp["We_blk"]), const(kp["be"]),
                      const(kp["W_comb"]), const(kp["b_gates"]),
                      const(kp["WoT"]), const(kp["bo"])],
            out_specs=(row(out_dim), row(H), row(H))),
        input_output_aliases={2: 2},   # c (f32) -> c_new (f32), same shape
        compiler_params=pltpu.CompilerParams(
            dimension_semantics=("parallel",),
            vmem_limit_bytes=32 * 1024 * 1024),
    )(x_flat, h_bf, c,
      kp["We_blk"], kp["be"],
      kp["W_comb"], kp["b_gates"],
      kp["WoT"], kp["bo"])

    return out[:BN], h_new[:BN], c_new[:BN]


# ----------------------------------------------------------------------------
# JAX glue: rel_obs / rel_directional / delete_diagonal / top-n nearest gather.
# (tiny O(N^2) work, data-dependent gather -> kept outside the kernel)
# ----------------------------------------------------------------------------
def build_nearest_grid(obs1, obs2, n):
    B, N, _ = obs2.shape
    # rel_obs: relative[b, i, j] = obs2[b, j] - obs2[b, i]
    rel_pos = obs2[:, None, :, :] - obs2[:, :, None, :]
    # rel_directional
    vel = obs2 - obs1
    rel_dir = vel[:, None, :, :] - vel[:, :, None, :]

    # delete_diagonal: for row i keep columns j != i (order preserved)
    rows = jnp.arange(N)[:, None]
    cols = jnp.arange(N - 1)[None, :]
    nbr = cols + (cols >= rows).astype(jnp.int32)                     # (N, N-1)
    nbr = jnp.broadcast_to(nbr[None, :, :, None], (B, N, N - 1, 1))
    rel_pos_nd = jnp.take_along_axis(rel_pos, nbr, axis=2)            # (B,N,N-1,2)
    rel_dir_nd = jnp.take_along_axis(rel_dir, nbr, axis=2)            # (B,N,N-1,2)

    overall = jnp.concatenate([rel_pos_nd, rel_dir_nd], axis=-1)      # (B,N,N-1,4)
    dist = jnp.linalg.norm(rel_pos_nd, axis=-1)
    dist = jnp.nan_to_num(dist, nan=1000.0)

    k_sel = min(n, N - 1)
    _, idx = jax.lax.top_k(-dist, k_sel)                              # (B,N,k_sel)
    sel = jnp.take_along_axis(overall, idx[..., None], axis=2)        # (B,N,k_sel,4)
    if k_sel < n:                                                     # pad when N-1 < n
        sel = jnp.concatenate(
            [sel, jnp.zeros((B, N, n - k_sel, 4), sel.dtype)], axis=2)
    return jnp.nan_to_num(sel)                                        # (B,N,n,4)


def nearest_neighbor_lstm_forward(obs1, obs2, h, c, kparams, n=4):
    B, N, _ = obs2.shape
    sel = build_nearest_grid(obs1, obs2, n)                           # (B,N,n,4)
    x_flat = sel.reshape(B * N, n * 4)                                # slot-major
    return nn_lstm_pallas(x_flat, h, c, kparams)


# ----------------------------------------------------------------------------
# Parameter init (canonical f32, shapes per NearestNeighborLSTM.__init__)
# and kernel-ready packaging (block-diag embedding, combined weight/bias, bf16).
# ----------------------------------------------------------------------------
def init_params(key, n=4, hidden_dim=256, out_dim=32):
    E = out_dim // n
    input_dim = 4
    ks = jax.random.split(key, 8)

    def u(k, shape, bound):
        return jax.random.uniform(k, shape, jnp.float32, -bound, bound)

    W_emb = u(ks[0], (E, input_dim), 1.0 / jnp.sqrt(input_dim))
    b_emb = u(ks[1], (E,), 1.0 / jnp.sqrt(input_dim))
    W_ih = u(ks[2], (4 * hidden_dim, out_dim), 1.0 / jnp.sqrt(hidden_dim))
    W_hh = u(ks[3], (4 * hidden_dim, hidden_dim), 1.0 / jnp.sqrt(hidden_dim))
    b_ih = u(ks[4], (4 * hidden_dim,), 1.0 / jnp.sqrt(hidden_dim))
    b_hh = u(ks[5], (4 * hidden_dim,), 1.0 / jnp.sqrt(hidden_dim))
    W_out = u(ks[6], (out_dim, hidden_dim), 1.0 / jnp.sqrt(hidden_dim))
    b_out = u(ks[7], (out_dim,), 1.0 / jnp.sqrt(hidden_dim))
    return {
        "We": W_emb.T, "be": b_emb,           # (4, E), (E,)
        "WihT": W_ih.T, "bih": b_ih,          # (out_dim, 4H), (4H,)
        "WhhT": W_hh.T, "bhh": b_hh,          # (H, 4H), (4H,)
        "WoT": W_out.T, "bo": b_out,          # (H, out_dim), (out_dim,)
    }


def prepare_kernel_params(params, n=4):
    We = params["We"]                                         # (4, E)
    # Block-diagonal embedding: concat-of-slot-embeddings == x_flat @ We_blk.
    We_blk = jax.scipy.linalg.block_diag(*([We] * n))         # (4n, nE) = (16, out_dim)
    be = jnp.tile(params["be"], n)[None, :]                   # (1, out_dim)
    # Fused gate weight [WhhT ; WihT] (h first: matches kernel concat order).
    W_comb = jnp.concatenate([params["WhhT"], params["WihT"]], axis=0)  # (H+out_dim, 4H)
    b_gates = (params["bih"] + params["bhh"])[None, :]        # (1, 4H)
    return {
        "We_blk": We_blk.astype(jnp.bfloat16),
        "be": be.astype(jnp.float32),
        "W_comb": W_comb.astype(jnp.bfloat16),
        "b_gates": b_gates.astype(jnp.float32),
        "WoT": params["WoT"].astype(jnp.bfloat16),            # (H, out_dim)
        "bo": params["bo"][None, :].astype(jnp.float32),      # (1, out_dim)
    }


# ----------------------------------------------------------------------------
# Pure-JAX f32 reference (same math, no Pallas, no bf16) for a sanity check.
# ----------------------------------------------------------------------------
def reference_forward(obs1, obs2, h, c, params, n=4):
    B, N, _ = obs2.shape
    sel = build_nearest_grid(obs1, obs2, n)                           # (B,N,n,4)
    emb = jnp.maximum(sel @ params["We"] + params["be"], 0.0)         # (B,N,n,E)
    x = emb.reshape(B * N, -1)                                        # (B*N, out_dim)
    H = h.shape[1]
    gates = (x @ params["WihT"] + params["bih"]
             + h @ params["WhhT"] + params["bhh"])
    i = jax.nn.sigmoid(gates[:, :H])
    f = jax.nn.sigmoid(gates[:, H:2 * H])
    g = jnp.tanh(gates[:, 2 * H:3 * H])
    o = jax.nn.sigmoid(gates[:, 3 * H:])
    c_new = f * c + i * g
    h_new = o * jnp.tanh(c_new)
    out = h_new @ params["WoT"] + params["bo"]
    return out, h_new, c_new


if __name__ == "__main__":
    key = jax.random.PRNGKey(0)
    k1, k2, k3 = jax.random.split(key, 3)

    B, N = 1, 8                          # single scene (hidden state is per-track)
    n, hidden_dim, out_dim = 4, 256, 32  # module defaults

    obs2 = 2.0 * jax.random.normal(k1, (B, N, 2), jnp.float32)            # positions at t
    obs1 = obs2 - 0.1 * jax.random.normal(k2, (B, N, 2), jnp.float32)     # positions at t-1

    params = init_params(k3, n=n, hidden_dim=hidden_dim, out_dim=out_dim)
    kparams = prepare_kernel_params(params, n=n)
    h0 = jnp.zeros((B * N, hidden_dim), jnp.float32)   # self.reset(...) -> zeros
    c0 = jnp.zeros((B * N, hidden_dim), jnp.float32)

    out, h1, c1 = nearest_neighbor_lstm_forward(obs1, obs2, h0, c0, kparams, n=n)
    jax.block_until_ready((out, h1, c1))

    ref_out, ref_h, ref_c = reference_forward(obs1, obs2, h0, c0, params, n=n)
    assert out.shape == (B * N, out_dim)
    assert h1.shape == (B * N, hidden_dim) and c1.shape == (B * N, hidden_dim)
    assert jnp.allclose(out, ref_out, atol=5e-2, rtol=5e-2)
    assert jnp.allclose(h1, ref_h, atol=5e-2, rtol=5e-2)
    assert jnp.allclose(c1, ref_c, atol=5e-2, rtol=5e-2)

    print("KERNEL_OK")
</pallas_src>

<mosaic_0001>
module attributes {stable_mosaic.version = 11 : i64} {
  func.func @_nn_lstm_kernel(%arg0: i32, %arg1: memref<16x16xf32, #tpu.memory_space<vmem>>, %arg2: memref<16x256xbf16, #tpu.memory_space<vmem>>, %arg3: memref<16x256xf32, #tpu.memory_space<vmem>>, %arg4: memref<16x32xbf16, #tpu.memory_space<vmem>>, %arg5: memref<1x32xf32, #tpu.memory_space<vmem>>, %arg6: memref<288x1024xbf16, #tpu.memory_space<vmem>>, %arg7: memref<1x1024xf32, #tpu.memory_space<vmem>>, %arg8: memref<256x32xbf16, #tpu.memory_space<vmem>>, %arg9: memref<1x32xf32, #tpu.memory_space<vmem>>, %arg10: memref<16x32xf32, #tpu.memory_space<vmem>>, %arg11: memref<16x256xf32, #tpu.memory_space<vmem>>, %arg12: memref<16x256xf32, #tpu.memory_space<vmem>>) attributes {dimension_semantics = [#tpu.dimension_semantics<parallel>], iteration_bounds = array<i64: 1>, scalar_prefetch = 0 : i64, scratch_operands = 0 : i64, tpu.core_type = #tpu.core_type<tc>, window_params = [{transform_indices = @transform_0, window_bounds = array<i64: 16, 16>}, {transform_indices = @transform_1, window_bounds = array<i64: 16, 256>}, {transform_indices = @transform_2, window_bounds = array<i64: 16, 256>}, {pipeline_mode = #tpu.pipeline_mode<synchronous>, transform_indices = @transform_3, window_bounds = array<i64: 16, 32>}, {pipeline_mode = #tpu.pipeline_mode<synchronous>, transform_indices = @transform_4, window_bounds = array<i64: 1, 32>}, {pipeline_mode = #tpu.pipeline_mode<synchronous>, transform_indices = @transform_5, window_bounds = array<i64: 288, 1024>}, {pipeline_mode = #tpu.pipeline_mode<synchronous>, transform_indices = @transform_6, window_bounds = array<i64: 1, 1024>}, {pipeline_mode = #tpu.pipeline_mode<synchronous>, transform_indices = @transform_7, window_bounds = array<i64: 256, 32>}, {pipeline_mode = #tpu.pipeline_mode<synchronous>, transform_indices = @transform_8, window_bounds = array<i64: 1, 32>}, {transform_indices = @transform_9, window_bounds = array<i64: 16, 32>}, {transform_indices = @transform_10, window_bounds = array<i64: 16, 256>}, {transform_indices = @transform_11, window_bounds = array<i64: 16, 256>}]} {
    %c0 = arith.constant 0 : index
    %c0_0 = arith.constant 0 : index
    %0 = vector.load %arg3[%c0, %c0_0] : memref<16x256xf32, #tpu.memory_space<vmem>>, vector<16x256xf32>
    %c0_1 = arith.constant 0 : index
    %c0_2 = arith.constant 0 : index
    %1 = vector.load %arg2[%c0_1, %c0_2] : memref<16x256xbf16, #tpu.memory_space<vmem>>, vector<16x256xbf16>
    %c0_3 = arith.constant 0 : index
    %c0_4 = arith.constant 0 : index
    %2 = vector.load %arg1[%c0_3, %c0_4] : memref<16x16xf32, #tpu.memory_space<vmem>>, vector<16x16xf32>
    %3 = arith.truncf %2 : vector<16x16xf32> to vector<16x16xbf16>
    %c0_5 = arith.constant 0 : index
    %c0_6 = arith.constant 0 : index
    %4 = vector.load %arg4[%c0_5, %c0_6] : memref<16x32xbf16, #tpu.memory_space<vmem>>, vector<16x32xbf16>
    %cst = arith.constant dense<0.000000e+00> : vector<16x32xf32>
    %5 = tpu.matmul %3, %4, %cst {dimension_numbers = #tpu.dot_dimension_numbers<[1], [0], [0], [1], [0, 0, 1, 1], [], []>} : vector<16x16xbf16>, vector<16x32xbf16>, vector<16x32xf32> -> vector<16x32xf32>
    %c0_7 = arith.constant 0 : index
    %c0_8 = arith.constant 0 : index
    %6 = vector.load %arg5[%c0_7, %c0_8] : memref<1x32xf32, #tpu.memory_space<vmem>>, vector<1x32xf32>
    %7 = vector.broadcast %6 : vector<1x32xf32> to vector<16x32xf32>
    %8 = arith.addf %5, %7 : vector<16x32xf32>
    %cst_9 = arith.constant 0.000000e+00 : f32
    %9 = vector.broadcast %cst_9 : f32 to vector<16x32xf32>
    %10 = arith.maximumf %8, %9 : vector<16x32xf32>
    %11 = arith.truncf %10 : vector<16x32xf32> to vector<16x32xbf16>
    %12 = tpu.concatenate %1, %11 in 1 : vector<16x256xbf16>, vector<16x32xbf16> -> vector<16x288xbf16>
    %c0_10 = arith.constant 0 : index
    %c0_11 = arith.constant 0 : index
    %13 = vector.load %arg6[%c0_10, %c0_11] : memref<288x1024xbf16, #tpu.memory_space<vmem>>, vector<288x256xbf16>
    %cst_12 = arith.constant dense<0.000000e+00> : vector<16x256xf32>
    %14 = tpu.matmul %12, %13, %cst_12 {dimension_numbers = #tpu.dot_dimension_numbers<[1], [0], [0], [1], [0, 0, 1, 1], [], []>} : vector<16x288xbf16>, vector<288x256xbf16>, vector<16x256xf32> -> vector<16x256xf32>
    %c0_13 = arith.constant 0 : index
    %c0_14 = arith.constant 0 : index
    %15 = vector.load %arg7[%c0_13, %c0_14] : memref<1x1024xf32, #tpu.memory_space<vmem>>, vector<1x256xf32>
    %16 = vector.broadcast %15 : vector<1x256xf32> to vector<16x256xf32>
    %17 = arith.addf %14, %16 : vector<16x256xf32>
    %18 = arith.negf %17 : vector<16x256xf32>
    %19 = math.exp %18 : vector<16x256xf32>
    %cst_15 = arith.constant 1.000000e+00 : f32
    %20 = vector.broadcast %cst_15 : f32 to vector<16x256xf32>
    %21 = arith.addf %20, %19 : vector<16x256xf32>
    %22 = arith.divf %20, %21 : vector<16x256xf32>
    %c0_16 = arith.constant 0 : index
    %c512 = arith.constant 512 : index
    %23 = vector.load %arg6[%c0_16, %c512] : memref<288x1024xbf16, #tpu.memory_space<vmem>>, vector<288x256xbf16>
    %cst_17 = arith.constant dense<0.000000e+00> : vector<16x256xf32>
    %24 = tpu.matmul %12, %23, %cst_17 {dimension_numbers = #tpu.dot_dimension_numbers<[1], [0], [0], [1], [0, 0, 1, 1], [], []>} : vector<16x288xbf16>, vector<288x256xbf16>, vector<16x256xf32> -> vector<16x256xf32>
    %c0_18 = arith.constant 0 : index
    %c512_19 = arith.constant 512 : index
    %25 = vector.load %arg7[%c0_18, %c512_19] : memref<1x1024xf32, #tpu.memory_space<vmem>>, vector<1x256xf32>
    %26 = vector.broadcast %25 : vector<1x256xf32> to vector<16x256xf32>
    %27 = arith.addf %24, %26 : vector<16x256xf32>
    %28 = math.tanh %27 : vector<16x256xf32>
    %29 = arith.mulf %22, %28 : vector<16x256xf32>
    %c0_20 = arith.constant 0 : index
    %c256 = arith.constant 256 : index
    %30 = vector.load %arg6[%c0_20, %c256] : memref<288x1024xbf16, #tpu.memory_space<vmem>>, vector<288x256xbf16>
    %cst_21 = arith.constant dense<0.000000e+00> : vector<16x256xf32>
    %31 = tpu.matmul %12, %30, %cst_21 {dimension_numbers = #tpu.dot_dimension_numbers<[1], [0], [0], [1], [0, 0, 1, 1], [], []>} : vector<16x288xbf16>, vector<288x256xbf16>, vector<16x256xf32> -> vector<16x256xf32>
    %c0_22 = arith.constant 0 : index
    %c256_23 = arith.constant 256 : index
    %32 = vector.load %arg7[%c0_22, %c256_23] : memref<1x1024xf32, #tpu.memory_space<vmem>>, vector<1x256xf32>
    %33 = vector.broadcast %32 : vector<1x256xf32> to vector<16x256xf32>
    %34 = arith.addf %31, %33 : vector<16x256xf32>
    %35 = arith.negf %34 : vector<16x256xf32>
    %36 = math.exp %35 : vector<16x256xf32>
    %cst_24 = arith.constant 1.000000e+00 : f32
    %37 = vector.broadcast %cst_24 : f32 to vector<16x256xf32>
    %38 = arith.addf %37, %36 : vector<16x256xf32>
    %39 = arith.divf %37, %38 : vector<16x256xf32>
    %40 = arith.mulf %39, %0 : vector<16x256xf32>
    %41 = arith.addf %40, %29 : vector<16x256xf32>
    %c0_25 = arith.constant 0 : index
    %c768 = arith.constant 768 : index
    %42 = vector.load %arg6[%c0_25, %c768] : memref<288x1024xbf16, #tpu.memory_space<vmem>>, vector<288x256xbf16>
    %cst_26 = arith.constant dense<0.000000e+00> : vector<16x256xf32>
    %43 = tpu.matmul %12, %42, %cst_26 {dimension_numbers = #tpu.dot_dimension_numbers<[1], [0], [0], [1], [0, 0, 1, 1], [], []>} : vector<16x288xbf16>, vector<288x256xbf16>, vector<16x256xf32> -> vector<16x256xf32>
    %c0_27 = arith.constant 0 : index
    %c768_28 = arith.constant 768 : index
    %44 = vector.load %arg7[%c0_27, %c768_28] : memref<1x1024xf32, #tpu.memory_space<vmem>>, vector<1x256xf32>
    %45 = vector.broadcast %44 : vector<1x256xf32> to vector<16x256xf32>
    %46 = arith.addf %43, %45 : vector<16x256xf32>
    %47 = arith.negf %46 : vector<16x256xf32>
    %48 = math.exp %47 : vector<16x256xf32>
    %cst_29 = arith.constant 1.000000e+00 : f32
    %49 = vector.broadcast %cst_29 : f32 to vector<16x256xf32>
    %50 = arith.addf %49, %48 : vector<16x256xf32>
    %51 = arith.divf %49, %50 : vector<16x256xf32>
    %52 = math.tanh %41 : vector<16x256xf32>
    %53 = arith.mulf %51, %52 : vector<16x256xf32>
    %c0_30 = arith.constant 0 : index
    %c0_31 = arith.constant 0 : index
    %54 = vector.load %arg12[%c0_30, %c0_31] : memref<16x256xf32, #tpu.memory_space<vmem>>, vector<16x256xf32>
    tpu.vector_store %arg12[%c0_30, %c0_31], %41 {strides = array<i32>} : memref<16x256xf32, #tpu.memory_space<vmem>>, vector<16x256xf32>,
    %c0_32 = arith.constant 0 : index
    %c0_33 = arith.constant 0 : index
    %55 = vector.load %arg11[%c0_32, %c0_33] : memref<16x256xf32, #tpu.memory_space<vmem>>, vector<16x256xf32>
    tpu.vector_store %arg11[%c0_32, %c0_33], %53 {strides = array<i32>} : memref<16x256xf32, #tpu.memory_space<vmem>>, vector<16x256xf32>,
    %56 = arith.truncf %53 : vector<16x256xf32> to vector<16x256xbf16>
    %c0_34 = arith.constant 0 : index
    %c0_35 = arith.constant 0 : index
    %57 = vector.load %arg8[%c0_34, %c0_35] : memref<256x32xbf16, #tpu.memory_space<vmem>>, vector<256x32xbf16>
    %cst_36 = arith.constant dense<0.000000e+00> : vector<16x32xf32>
    %58 = tpu.matmul %56, %57, %cst_36 {dimension_numbers = #tpu.dot_dimension_numbers<[1], [0], [0], [1], [0, 0, 1, 1], [], []>} : vector<16x256xbf16>, vector<256x32xbf16>, vector<16x32xf32> -> vector<16x32xf32>
    %c0_37 = arith.constant 0 : index
    %c0_38 = arith.constant 0 : index
    %59 = vector.load %arg9[%c0_37, %c0_38] : memref<1x32xf32, #tpu.memory_space<vmem>>, vector<1x32xf32>
    %60 = vector.broadcast %59 : vector<1x32xf32> to vector<16x32xf32>
    %61 = arith.addf %58, %60 : vector<16x32xf32>
    %c0_39 = arith.constant 0 : index
    %c0_40 = arith.constant 0 : index
    %62 = vector.load %arg10[%c0_39, %c0_40] : memref<16x32xf32, #tpu.memory_space<vmem>>, vector<16x32xf32>
    tpu.vector_store %arg10[%c0_39, %c0_40], %61 {strides = array<i32>} : memref<16x32xf32, #tpu.memory_space<vmem>>, vector<16x32xf32>,
    return
  }
  func.func @transform_0(%arg0: i32) -> (i32, i32) {
    %c0_i32 = arith.constant 0 : i32
    %c0_i32_0 = arith.constant 0 : i32
    return %arg0, %c0_i32 : i32, i32
  }
  func.func @transform_1(%arg0: i32) -> (i32, i32) {
    %c0_i32 = arith.constant 0 : i32
    %c0_i32_0 = arith.constant 0 : i32
    return %arg0, %c0_i32 : i32, i32
  }
  func.func @transform_2(%arg0: i32) -> (i32, i32) {
    %c0_i32 = arith.constant 0 : i32
    %c0_i32_0 = arith.constant 0 : i32
    return %arg0, %c0_i32 : i32, i32
  }
  func.func @transform_3(%arg0: i32) -> (i32, i32) {
    %c0_i32 = arith.constant 0 : i32
    %c0_i32_0 = arith.constant 0 : i32
    %c0_i32_1 = arith.constant 0 : i32
    return %c0_i32, %c0_i32_0 : i32, i32
  }
  func.func @transform_4(%arg0: i32) -> (i32, i32) {
    %c0_i32 = arith.constant 0 : i32
    %c0_i32_0 = arith.constant 0 : i32
    %c0_i32_1 = arith.constant 0 : i32
    return %c0_i32, %c0_i32_0 : i32, i32
  }
  func.func @transform_5(%arg0: i32) -> (i32, i32) {
    %c0_i32 = arith.constant 0 : i32
    %c0_i32_0 = arith.constant 0 : i32
    %c0_i32_1 = arith.constant 0 : i32
    return %c0_i32, %c0_i32_0 : i32, i32
  }
  func.func @transform_6(%arg0: i32) -> (i32, i32) {
    %c0_i32 = arith.constant 0 : i32
    %c0_i32_0 = arith.constant 0 : i32
    %c0_i32_1 = arith.constant 0 : i32
    return %c0_i32, %c0_i32_0 : i32, i32
  }
  func.func @transform_7(%arg0: i32) -> (i32, i32) {
    %c0_i32 = arith.constant 0 : i32
    %c0_i32_0 = arith.constant 0 : i32
    %c0_i32_1 = arith.constant 0 : i32
    return %c0_i32, %c0_i32_0 : i32, i32
  }
  func.func @transform_8(%arg0: i32) -> (i32, i32) {
    %c0_i32 = arith.constant 0 : i32
    %c0_i32_0 = arith.constant 0 : i32
    %c0_i32_1 = arith.constant 0 : i32
    return %c0_i32, %c0_i32_0 : i32, i32
  }
  func.func @transform_9(%arg0: i32) -> (i32, i32) {
    %c0_i32 = arith.constant 0 : i32
    %c0_i32_0 = arith.constant 0 : i32
    return %arg0, %c0_i32 : i32, i32
  }
  func.func @transform_10(%arg0: i32) -> (i32, i32) {
    %c0_i32 = arith.constant 0 : i32
    %c0_i32_0 = arith.constant 0 : i32
    return %arg0, %c0_i32 : i32, i32
  }
  func.func @transform_11(%arg0: i32) -> (i32, i32) {
    %c0_i32 = arith.constant 0 : i32
    %c0_i32_0 = arith.constant 0 : i32
    return %arg0, %c0_i32 : i32, i32
  }
}

</mosaic_0001>

<bundles_post_ra>
// kernel: tpu_custom_call.1
= control target key start
LH: loop header
LB: loop body
LE: loop exit
PB: predicated region body
PF: predicated region fallthrough
CT: control target
= control target key end

     0   :  { %17 = vsyncpa [#allocation3], 0  ;;  %s2500_s0 = inlined_call_operand.vmem [shape: f32[16,16], index: 0, kind: input, shape index: {}]   ;;  %s2501_s1 = inlined_call_operand.vmem [shape: bf16[16,256], index: 1, kind: input, shape index: {}]   ;;  %s2502_s2 = inlined_call_operand.hbm [shape: f32[16,256], index: 2, kind: input, shape index: {}, may-alias: {2,11}]   ;;  %s2503_s3 = inlined_call_operand.vmem [shape: bf16[16,32], index: 3, kind: input, shape index: {}]   ;;  %s2504_s4 = inlined_call_operand.vmem [shape: f32[1,32], index: 4, kind: input, shape index: {}]   ;;  %s2505_s5 = inlined_call_operand.hbm [shape: bf16[288,1024], index: 5, kind: input, shape index: {}]   ;;  %s2506_s6 = inlined_call_operand.vmem [shape: f32[1,1024], index: 6, kind: input, shape index: {}]   ;;  %s2507_s7 = inlined_call_operand.vmem [shape: bf16[256,32], index: 7, kind: input, shape index: {}]   ;;  %s2508_s8 = inlined_call_operand.vmem [shape: f32[1,32], index: 8, kind: input, shape index: {}]   ;;  %s2509_s9 = inlined_call_operand.hbm [shape: f32[16,32], index: 9, kind: output, shape index: {0}]   ;;  %s2510_s10 = inlined_call_operand.hbm [shape: f32[16,256], index: 10, kind: output, shape index: {1}]   ;;  %s2511_s11 = inlined_call_operand.hbm [shape: f32[16,256], index: 11, kind: output, shape index: {2}, may-alias: {2,11}]  }
   0x1   :  { %18 = vsyncpa [#allocation6], 0 }
   0x2   :  { %19 = vsyncpa [#allocation4], 0 }
   0x3   :  { %20 = vsyncpa [#allocation9], 0  ;;  %s2201_s17 = smov [#allocation2]   ;;  %s2083_s21 = scalar_lea.hbm %s2502_s2, 512 }
   0x4   :  { %s30_s18 = sshll.u32 %s2201_s17, 4  ;;  %p2084_p0 = scmp.ne.s32.totalorder %s2502_s2, %s2083_s21  ;;  %s31_s18 = int_to_ptr.vmem [resolvable:$true] %s30_s18 }
   0x5   :  { %p2087_p1 = scmp.lt.u32.totalorder %s2083_s21, %s2502_s2 }
   0x7   :  { %p2089_p2 = pnand %p2087_p1, %p2084_p0 }
   0x9   :  { %2092 = shalt.err (!%p2089_p2)
}
   0xa   :  { %s2093_s26 = scalar_lea.vmem %s31_s18, 512  ;;  %p2098_p4 = scmp.lt.s32.totalorder %s31_s18, %s31_s18 }
   0xb   :  { %p2094_p3 = scmp.ne.s32.totalorder %s31_s18, %s2093_s26  ;;  %p2099_p5 = scmp.lt.s32.totalorder %s2093_s26, %s2093_s26 }
   0xd   :  { %p2100_p6 = por %p2099_p5, %p2098_p4 }
   0xf   :  { %p2101_p7 = pnand %p2100_p6, %p2094_p3 }
  0x11   :  { %2104 = shalt.err (!%p2101_p7)
}
  0x12   :  { %s2202_s27 = smov 256   ;;  %s2203_s28 = smov 16  }
  0x13   :  { %36 = dma.hbm_to_vmem [thread:$0]  %s2502_s2, 512, %s31_s18, [#allocation3], %s2202_s27, %s2202_s27, %s2203_s28  }
  0x14   :  { %s2204_s12 = smov [#allocation5]   ;;  %s2105_s16 = scalar_lea.hbm %s2505_s5, 18432 }
  0x15   :  { %s46_s13 = sshll.u32 %s2204_s12, 4  ;;  %p2106_p8 = scmp.ne.s32.totalorder %s2505_s5, %s2105_s16  ;;  %s47_s13 = int_to_ptr.vmem [resolvable:$true] %s46_s13 }
  0x16   :  { %p2109_p9 = scmp.lt.u32.totalorder %s2105_s16, %s2505_s5 }
  0x18   :  { %p2111_p10 = pnand %p2109_p9, %p2106_p8 }
  0x1a   :  { %2114 = shalt.err (!%p2111_p10)
}
  0x1b   :  { %s2115_s22 = scalar_lea.vmem %s47_s13, 18432  ;;  %p2120_p12 = scmp.lt.s32.totalorder %s47_s13, %s47_s13 }
  0x1c   :  { %p2116_p11 = scmp.ne.s32.totalorder %s47_s13, %s2115_s22  ;;  %p2121_p13 = scmp.lt.s32.totalorder %s2115_s22, %s2115_s22 }
  0x1e   :  { %p2122_p0 = por %p2121_p13, %p2120_p12 }
  0x20   :  { %p2123_p1 = pnand %p2122_p0, %p2116_p11 }
  0x22   :  { %2126 = shalt.err (!%p2123_p1)
}
  0x23   :  { %s2205_s2 = smov 512   ;;  %s2206_s18 = smov 32  }
  0x24   :  { %52 = dma.hbm_to_vmem [thread:$0]  %s2505_s5, 18432, %s47_s13, [#allocation6], %s2205_s2, %s2205_s2, %s2206_s18  }
  0x25   :  { %2193 = dma.done.wait [#allocation3], 512  }
  0x26   :  { %2194 = vsyncadd [#allocation3], 4294966784 }
  0x27   :  { %2195 = dma.done.wait [#allocation6], 18432  }
  0x28   :  { %2196 = vsyncadd [#allocation6], 4294948864  ;;  %v2207_v0 = vmov 0.0   ;;  %vm2208_vm0 = vmmov 0   ;;  %v1999_v1 = vld [vmem:[%s2503_s3] sm:$0xff]   ;;  %v73_v3 = vld [vmem:[%s2500_s0 + $0x8] sm:$0xff] }
  0x29   :  { %1947 = vmatprep.subr.bf16.mxu0 %v2207_v0  ;;  %1949 = vmatprep.mubr.msk.bf16.mxu0 %vm2208_vm0, %v2207_v0  ;;  %v72_v2 = vld [vmem:[%s2500_s0] sm:$0xff]  ;;  %vm90_vm1 = vcmask 130048   ;;  %vm376_vm2 = vcmask 261120  }
  0x2a   :  { %v148_v4 = vld [vmem:[#allocation5] sm:$0xff]  ;;  %1948 = vmatpush3.bf16.msra.mxu0 %v1999_v1  ;;  %v74_v5 = vpack.c.bf16 %v73_v3, %v72_v2 }
  0x2b   :  { %v149_v6 = vld [vmem:[#allocation5 + $0x20] sm:$0xff] }
  0x2c   :  { %v150_v7 = vld [vmem:[#allocation5 + $0x40] sm:$0xff]  ;;  %v1747_v9 = vcombine.high %v148_v4, %v149_v6  ;;  %v1746_v10 = vcombine.low %v148_v4, %v149_v6 }
  0x2d   :  { %v151_v8 = vld [vmem:[#allocation5 + $0x60] sm:$0xff]  ;;  %1950 = vmatmul.mubr.msk.bf16.vlgmr.msra.gmra.mrb[0].mxu0 %vm90_vm1, %v74_v5 }
  0x2e   :  { %v1749_v11 = vcombine.high %v150_v7, %v151_v8  ;;  %v152_v12 = vld [vmem:[#allocation5 + $0x80] sm:$0xff]  ;;  %380 = vmatprep.subr.bf16.mxu1 %v1747_v9  ;;  %v1748_v14 = vcombine.low %v150_v7, %v151_v8 }
  0x2f   :  { %v153_v13 = vld [vmem:[#allocation5 + $0xa0] sm:$0xff]  ;;  %381 = vmatpush1.bf16.msra.mxu1 %v1746_v10 }
  0x30   :  { %382 = vmatprep.subr.bf16.mxu1 %v1749_v11  ;;  %v1751_v15 = vcombine.high %v152_v12, %v153_v13  ;;  %v154_v16 = vld [vmem:[#allocation5 + $0xc0] sm:$0xff]  ;;  %v1750_v18 = vcombine.low %v152_v12, %v153_v13 }
  0x31   :  { %v155_v17 = vld [vmem:[#allocation5 + $0xe0] sm:$0xff] }
  0x32   :  { %v1753_v19 = vcombine.high %v154_v16, %v155_v17  ;;  %v156_v20 = vld [vmem:[#allocation5 + $0x100] sm:$0xff]  ;;  %v1752_v22 = vcombine.low %v154_v16, %v155_v17  ;;  %v2323_v16 = vld [vmem:[#allocation5 + $0x30] sm:$0xff] }
  0x33   :  { %383 = vmatpush1.bf16.msra.mxu1 %v1748_v14  ;;  %v157_v21 = vld [vmem:[#allocation5 + $0x120] sm:$0xff] }
  0x34   :  { %384 = vmatprep.subr.bf16.mxu1 %v1751_v15  ;;  %v158_v23 = vld [vmem:[#allocation5 + $0x140] sm:$0xff]  ;;  %v1755_v25 = vcombine.high %v156_v20, %v157_v21  ;;  %v1754_v26 = vcombine.low %v156_v20, %v157_v21  ;;  %v2321_v15 = vld [vmem:[#allocation5 + $0x10] sm:$0xff]  ;;  %v812_v20 = vld [vmem:[#allocation5 + $0x8] sm:$0xff] }
  0x35   :  { %v159_v24 = vld [vmem:[#allocation5 + $0x160] sm:$0xff]  ;;  %v1788_v17 = vcombine.high %v2321_v15, %v2323_v16  ;;  %v813_v21 = vld [vmem:[#allocation5 + $0x28] sm:$0xff] }
  0x36   :  { %v160_v27 = vld [vmem:[#allocation5 + $0x180] sm:$0xff]  ;;  %v1757_v29 = vcombine.high %v158_v23, %v159_v24  ;;  %v1756_v30 = vcombine.low %v158_v23, %v159_v24  ;;  %v1824_v23 = vcombine.low %v812_v20, %v813_v21  ;;  %v814_v24 = vld [vmem:[#allocation5 + $0x48] sm:$0xff] }
  0x37   :  { %385 = vmatpush1.bf16.msra.mxu1 %v1750_v18  ;;  %v161_v28 = vld [vmem:[#allocation5 + $0x1a0] sm:$0xff]  ;;  %v1787_v18 = vcombine.low %v2321_v15, %v2323_v16  ;;  %v501_v15 = vld [vmem:[#allocation5 + $0x170] sm:$0xff] }
  0x38   :  { %386 = vmatprep.subr.bf16.mxu1 %v1753_v19  ;;  %v1759_v31 = vcombine.high %v160_v27, %v161_v28  ;;  %v162_v32 = vld [vmem:[#allocation5 + $0x1c0] sm:$0xff]  ;;  %v1758_v34 = vcombine.low %v160_v27, %v161_v28  ;;  %v2209_v19 = vmov 0   ;;  %v816_v28 = vld [vmem:[#allocation5 + $0x88] sm:$0xff] }
  0x39   :  { %v163_v33 = vld [vmem:[#allocation5 + $0x1e0] sm:$0xff]  ;;  %455 = vmatprep.mubr.bf16.mxu0 %v2209_v19 }
  0x3a   :  { %v1761_v35 = vcombine.high %v162_v32, %v163_v33  ;;  %v164_v36 = vld [vmem:[#allocation5 + $0x200] sm:$0xff]  ;;  %v1760_v38 = vcombine.low %v162_v32, %v163_v33  ;;  %v818_v32 = vld [vmem:[#allocation5 + $0xc8] sm:$0xff] }
  0x3b   :  { %387 = vmatpush1.bf16.msra.mxu1 %v1752_v22  ;;  %v165_v37 = vld [vmem:[#allocation5 + $0x220] sm:$0xff]  ;;  %v1825_v22 = vcombine.high %v812_v20, %v813_v21  ;;  %v819_v33 = vld [vmem:[#allocation5 + $0xe8] sm:$0xff] }
  0x3c   :  { %388 = vmatprep.subr.bf16.mxu1 %v1755_v25  ;;  %v1763_v39 = vcombine.high %v164_v36, %v165_v37  ;;  %v166_v40 = vld [vmem:[#allocation5 + $0x240] sm:$0xff]  ;;  %v1762_v42 = vcombine.low %v164_v36, %v165_v37  ;;  %v815_v25 = vld [vmem:[#allocation5 + $0x68] sm:$0xff] }
  0x3d   :  { %v167_v41 = vld [vmem:[#allocation5 + $0x260] sm:$0xff]  ;;  %v1826_v27 = vcombine.low %v814_v24, %v815_v25  ;;  %v820_v36 = vld [vmem:[#allocation5 + $0x108] sm:$0xff] }
  0x3e   :  { %v1765_v43 = vcombine.high %v166_v40, %v167_v41  ;;  %v168_v44 = vld [vmem:[#allocation5 + $0x280] sm:$0xff]  ;;  %v1764_v46 = vcombine.low %v166_v40, %v167_v41  ;;  %v821_v37 = vld [vmem:[#allocation5 + $0x128] sm:$0xff] }
  0x3f   :  { %389 = vmatpush1.bf16.msra.mxu1 %v1754_v26  ;;  %v169_v45 = vld [vmem:[#allocation5 + $0x2a0] sm:$0xff]  ;;  %v1827_v26 = vcombine.high %v814_v24, %v815_v25  ;;  %v822_v40 = vld [vmem:[#allocation5 + $0x148] sm:$0xff] }
  0x40   :  { %390 = vmatprep.subr.bf16.mxu1 %v1757_v29  ;;  %v1767_v47 = vcombine.high %v168_v44, %v169_v45  ;;  %v170_v48 = vld [vmem:[#allocation5 + $0x2c0] sm:$0xff]  ;;  %v1766_v50 = vcombine.low %v168_v44, %v169_v45  ;;  %v817_v29 = vld [vmem:[#allocation5 + $0xa8] sm:$0xff] }
  0x41   :  { %v171_v49 = vld [vmem:[#allocation5 + $0x2e0] sm:$0xff]  ;;  %v823_v41 = vld [vmem:[#allocation5 + $0x168] sm:$0xff] }
  0x42   :  { %v1769_v51 = vcombine.high %v170_v48, %v171_v49  ;;  %v172_v52 = vld [vmem:[#allocation5 + $0x300] sm:$0xff]  ;;  %v1768_v54 = vcombine.low %v170_v48, %v171_v49  ;;  %v824_v44 = vld [vmem:[#allocation5 + $0x188] sm:$0xff] }
  0x43   :  { %391 = vmatpush1.bf16.msra.mxu1 %v1756_v30  ;;  %v173_v53 = vld [vmem:[#allocation5 + $0x320] sm:$0xff]  ;;  %v1829_v30 = vcombine.high %v816_v28, %v817_v29  ;;  %v825_v45 = vld [vmem:[#allocation5 + $0x1a8] sm:$0xff] }
  0x44   :  { %392 = vmatprep.subr.bf16.mxu1 %v1759_v31  ;;  %v1771_v55 = vcombine.high %v172_v52, %v173_v53  ;;  %v174_v56 = vld [vmem:[#allocation5 + $0x340] sm:$0xff]  ;;  %v1770_v58 = vcombine.low %v172_v52, %v173_v53  ;;  %v1828_v31 = vcombine.low %v816_v28, %v817_v29  ;;  %v826_v48 = vld [vmem:[#allocation5 + $0x1c8] sm:$0xff] }
  0x45   :  { %v175_v57 = vld [vmem:[#allocation5 + $0x360] sm:$0xff]  ;;  %v827_v49 = vld [vmem:[#allocation5 + $0x1e8] sm:$0xff] }
  0x46   :  { %v1773_v59 = vcombine.high %v174_v56, %v175_v57  ;;  %v176_v60 = vld [vmem:[#allocation5 + $0x380] sm:$0xff]  ;;  %v1772_v62 = vcombine.low %v174_v56, %v175_v57  ;;  %v828_v52 = vld [vmem:[#allocation5 + $0x208] sm:$0xff] }
  0x47   :  { %393 = vmatpush1.bf16.msra.mxu1 %v1758_v34  ;;  %v177_v61 = vld [vmem:[#allocation5 + $0x3a0] sm:$0xff]  ;;  %v1831_v34 = vcombine.high %v818_v32, %v819_v33  ;;  %v829_v53 = vld [vmem:[#allocation5 + $0x228] sm:$0xff] }
  0x48   :  { %394 = vmatprep.subr.bf16.mxu1 %v1761_v35  ;;  %v1775_v63 = vcombine.high %v176_v60, %v177_v61  ;;  %v180_v0 = vld [vmem:[#allocation5 + $0x400] sm:$0xff]  ;;  %v1774_v2 = vcombine.low %v176_v60, %v177_v61  ;;  %v1830_v35 = vcombine.low %v818_v32, %v819_v33  ;;  %v830_v56 = vld [vmem:[#allocation5 + $0x248] sm:$0xff]  ;;  %v492_v33 = vld [vmem:[#allocation5 + $0x50] sm:$0xff] }
  0x49   :  { %v181_v1 = vld [vmem:[#allocation5 + $0x420] sm:$0xff]  ;;  %v831_v57 = vld [vmem:[#allocation5 + $0x268] sm:$0xff] }
  0x4a   :  { %v1779_v3 = vcombine.high %v180_v0, %v181_v1  ;;  %v1778_v4 = vcombine.low %v180_v0, %v181_v1  ;;  %v178_v5 = vld [vmem:[#allocation5 + $0x3c0] sm:$0xff]  ;;  %v832_v60 = vld [vmem:[#allocation5 + $0x288] sm:$0xff] }
  0x4b   :  { %395 = vmatpush1.bf16.msra.mxu1 %v1760_v38  ;;  %v179_v6 = vld [vmem:[#allocation5 + $0x3e0] sm:$0xff]  ;;  %v1833_v38 = vcombine.high %v820_v36, %v821_v37  ;;  %v833_v61 = vld [vmem:[#allocation5 + $0x2a8] sm:$0xff] }
  0x4c   :  { %396 = vmatprep.subr.bf16.mxu1 %v1763_v39  ;;  %423 = vmatprep.subr.bf16.mxu0 %v1779_v3  ;;  %v1777_v7 = vcombine.high %v178_v5, %v179_v6  ;;  %v182_v8 = vld [vmem:[#allocation5 + $0x440] sm:$0xff]  ;;  %v1776_v10 = vcombine.low %v178_v5, %v179_v6  ;;  %v1832_v39 = vcombine.low %v820_v36, %v821_v37  ;;  %v834_v0 = vld [vmem:[#allocation5 + $0x2c8] sm:$0xff] }
  0x4d   :  { %424 = vmatpush1.bf16.msra.mxu0 %v1778_v4  ;;  %v183_v9 = vld [vmem:[#allocation5 + $0x460] sm:$0xff]  ;;  %v835_v1 = vld [vmem:[#allocation5 + $0x2e8] sm:$0xff] }
  0x4e   :  { %v1781_v11 = vcombine.high %v182_v8, %v183_v9  ;;  %v1780_v12 = vcombine.low %v182_v8, %v183_v9  ;;  %v2314_v13 = vld [vmem:[%s2501_s1 + $0x4] ss:$8 sps:$4 sm:$0xff]   ;;  %v2319_v14 = vld [vmem:[%s2501_s1] ss:$8 sps:$4 sm:$0xff]   ;;  %v1846_v3 = vcombine.low %v834_v0, %v835_v1 }
  0x4f   :  { %397 = vmatpush1.bf16.msra.mxu1 %v1762_v42  ;;  %412 = vmatprep.mubr.bf16.mxu1 %v2314_v13  ;;  %v1835_v42 = vcombine.high %v822_v40, %v823_v41  ;;  %v836_v4 = vld [vmem:[#allocation5 + $0x308] sm:$0xff] }
  0x50   :  { %398 = vmatprep.subr.bf16.mxu1 %v1765_v43  ;;  %425 = vmatprep.subr.bf16.mxu0 %v1781_v11  ;;  %v1834_v43 = vcombine.low %v822_v40, %v823_v41  ;;  %v837_v5 = vld [vmem:[#allocation5 + $0x328] sm:$0xff]  ;;  %v495_v40 = vld [vmem:[#allocation5 + $0xb0] sm:$0xff] }
  0x51   :  { %426 = vmatpush1.bf16.msra.mxu0 %v1780_v12  ;;  %v1849_v6 = vcombine.high %v836_v4, %v837_v5  ;;  %v838_v8 = vld [vmem:[#allocation5 + $0x348] sm:$0xff] }
  0x52   :  { %718 = vmatprep.subr.bf16.mxu0 %v1788_v17  ;;  %v839_v9 = vld [vmem:[#allocation5 + $0x368] sm:$0xff] }
  0x53   :  { %399 = vmatpush1.bf16.msra.mxu1 %v1764_v46  ;;  %v1837_v46 = vcombine.high %v824_v44, %v825_v45  ;;  %v1851_v11 = vcombine.high %v838_v8, %v839_v9  ;;  %v840_v12 = vld [vmem:[#allocation5 + $0x388] sm:$0xff] }
  0x54   :  { %400 = vmatprep.subr.bf16.mxu1 %v1767_v47  ;;  %v1836_v47 = vcombine.low %v824_v44, %v825_v45  ;;  %v841_v17 = vld [vmem:[#allocation5 + $0x3a8] sm:$0xff]  ;;  %v497_v44 = vld [vmem:[#allocation5 + $0xf0] sm:$0xff] }
  0x55   :  { %v1853_v20 = vcombine.high %v840_v12, %v841_v17  ;;  %v1852_v21 = vcombine.low %v840_v12, %v841_v17  ;;  %v514_v12 = vld [vmem:[#allocation5 + $0x310] sm:$0xff] }
  0x56   :  { %v515_v17 = vld [vmem:[#allocation5 + $0x330] sm:$0xff] }
  0x57   :  { %401 = vmatpush1.bf16.msra.mxu1 %v1766_v50  ;;  %v1839_v50 = vcombine.high %v826_v48, %v827_v49 }
  0x58   :  { %402 = vmatprep.subr.bf16.mxu1 %v1769_v51  ;;  %v1838_v51 = vcombine.low %v826_v48, %v827_v49  ;;  %v499_v48 = vld [vmem:[#allocation5 + $0x130] sm:$0xff] }
  0x5b   :  { %403 = vmatpush1.bf16.msra.mxu1 %v1768_v54  ;;  %v1841_v54 = vcombine.high %v828_v52, %v829_v53 }
  0x5c   :  { %404 = vmatprep.subr.bf16.mxu1 %v1771_v55  ;;  %v1840_v55 = vcombine.low %v828_v52, %v829_v53  ;;  %v502_v52 = vld [vmem:[#allocation5 + $0x190] sm:$0xff] }
  0x5d   :  { %v503_v53 = vld [vmem:[#allocation5 + $0x1b0] sm:$0xff] }
  0x5f   :  { %405 = vmatpush1.bf16.msra.mxu1 %v1770_v58  ;;  %v1843_v58 = vcombine.high %v830_v56, %v831_v57 }
  0x60   :  { %406 = vmatprep.subr.bf16.mxu1 %v1773_v59  ;;  %v1842_v59 = vcombine.low %v830_v56, %v831_v57  ;;  %v504_v56 = vld [vmem:[#allocation5 + $0x1d0] sm:$0xff] }
  0x61   :  { %v505_v57 = vld [vmem:[#allocation5 + $0x1f0] sm:$0xff] }
  0x63   :  { %407 = vmatpush1.bf16.msra.mxu1 %v1772_v62  ;;  %v1845_v62 = vcombine.high %v832_v60, %v833_v61 }
  0x64   :  { %408 = vmatprep.subr.bf16.mxu1 %v1775_v63  ;;  %v1844_v63 = vcombine.low %v832_v60, %v833_v61  ;;  %v506_v60 = vld [vmem:[#allocation5 + $0x210] sm:$0xff] }
  0x65   :  { %v507_v61 = vld [vmem:[#allocation5 + $0x230] sm:$0xff] }
  0x67   :  { %409 = vmatpush1.bf16.msra.mxu1 %v1774_v2  ;;  %v1847_v2 = vcombine.high %v834_v0, %v835_v1  ;;  %v508_v0 = vld [vmem:[#allocation5 + $0x250] sm:$0xff] }
  0x68   :  { %410 = vmatprep.subr.bf16.mxu1 %v1777_v7  ;;  %v1848_v7 = vcombine.low %v836_v4, %v837_v5  ;;  %v509_v1 = vld [vmem:[#allocation5 + $0x270] sm:$0xff] }
  0x69   :  { %v510_v4 = vld [vmem:[#allocation5 + $0x290] sm:$0xff] }
  0x6a   :  { %v511_v5 = vld [vmem:[#allocation5 + $0x2b0] sm:$0xff] }
  0x6b   :  { %411 = vmatpush1.bf16.msra.mxu1 %v1776_v10  ;;  %v1850_v10 = vcombine.low %v838_v8, %v839_v9  ;;  %v512_v8 = vld [vmem:[#allocation5 + $0x2d0] sm:$0xff] }
  0x6c   :  { %1040 = vmatprep.subr.bf16.mxu1 %v1825_v22  ;;  %v842_v22 = vld [vmem:[#allocation5 + $0x3c8] sm:$0xff]  ;;  %v513_v9 = vld [vmem:[#allocation5 + $0x2f0] sm:$0xff] }
  0x6e   :  { %413 = vmatmul.mubr.bf16.vlgmr.msra.gmra.mrb[0].mxu1 %v2319_v14 }
  0x6f   :  { %1072 = vmatprep.mubr.bf16.mxu1 %v2314_v13  ;;  %1041 = vmatpush1.bf16.msra.mxu1 %v1824_v23  ;;  %v843_v23 = vld [vmem:[#allocation5 + $0x3e8] sm:$0xff] }
  0x70   :  { %1042 = vmatprep.subr.bf16.mxu1 %v1827_v26  ;;  %v1854_v24 = vcombine.low %v842_v22, %v843_v23  ;;  %v1855_v25 = vcombine.high %v842_v22, %v843_v23  ;;  %v1741_v26 = vld [vmem:[%s2504_s4] ss:$0 sm:$0xff]  ;;  %v516_v22 = vld [vmem:[#allocation5 + $0x350] sm:$0xff] }
  0x71   :  { %v517_v23 = vld [vmem:[#allocation5 + $0x370] sm:$0xff] }
  0x73   :  { %1043 = vmatpush1.bf16.msra.mxu1 %v1826_v27 }
  0x74   :  { %1044 = vmatprep.subr.bf16.mxu1 %v1829_v30 }
  0x77   :  { %1045 = vmatpush1.bf16.msra.mxu1 %v1828_v31 }
  0x78   :  { %1046 = vmatprep.subr.bf16.mxu1 %v1831_v34  ;;  %v493_v34 = vld [vmem:[#allocation5 + $0x70] sm:$0xff] }
  0x79   :  { %v1789_v41 = vcombine.low %v492_v33, %v493_v34 }
  0x7b   :  { %1047 = vmatpush1.bf16.msra.mxu1 %v1830_v35 }
  0x7c   :  { %1048 = vmatprep.subr.bf16.mxu1 %v1833_v38  ;;  %v1790_v38 = vcombine.high %v492_v33, %v493_v34  ;;  %v522_v34 = vld [vmem:[#allocation5 + $0x410] sm:$0xff] }
  0x7f   :  { %1049 = vmatpush1.bf16.msra.mxu1 %v1832_v39  ;;  %v494_v39 = vld [vmem:[#allocation5 + $0x90] sm:$0xff] }
  0x80   :  { %1050 = vmatprep.subr.bf16.mxu1 %v1835_v42  ;;  %v1792_v42 = vcombine.high %v494_v39, %v495_v40  ;;  %v1791_v45 = vcombine.low %v494_v39, %v495_v40  ;;  %v524_v39 = vld [vmem:[#allocation5 + $0x450] sm:$0xff] }
  0x81   :  { %v525_v40 = vld [vmem:[#allocation5 + $0x470] sm:$0xff] }
  0x83   :  { %1051 = vmatpush1.bf16.msra.mxu1 %v1834_v43  ;;  %v496_v43 = vld [vmem:[#allocation5 + $0xd0] sm:$0xff] }
  0x84   :  { %1052 = vmatprep.subr.bf16.mxu1 %v1837_v46  ;;  %v1794_v46 = vcombine.high %v496_v43, %v497_v44  ;;  %v1793_v49 = vcombine.low %v496_v43, %v497_v44  ;;  %v844_v43 = vld [vmem:[#allocation5 + $0x408] sm:$0xff] }
  0x85   :  { %v845_v44 = vld [vmem:[#allocation5 + $0x428] sm:$0xff] }
  0x87   :  { %1053 = vmatpush1.bf16.msra.mxu1 %v1836_v47  ;;  %v498_v47 = vld [vmem:[#allocation5 + $0x110] sm:$0xff] }
  0x88   :  { %1054 = vmatprep.subr.bf16.mxu1 %v1839_v50  ;;  %v1796_v50 = vcombine.high %v498_v47, %v499_v48  ;;  %v1795_v16 = vcombine.low %v498_v47, %v499_v48  ;;  %v846_v47 = vld [vmem:[#allocation5 + $0x448] sm:$0xff] }
  0x89   :  { %v847_v48 = vld [vmem:[#allocation5 + $0x468] sm:$0xff] }
  0x8b   :  { %1055 = vmatpush1.bf16.msra.mxu1 %v1838_v51  ;;  %v500_v51 = vld [vmem:[#allocation5 + $0x150] sm:$0xff] }
  0x8c   :  { %1056 = vmatprep.subr.bf16.mxu1 %v1841_v54  ;;  %v1797_v54 = vcombine.low %v500_v51, %v501_v15 }
  0x8f   :  { %1057 = vmatpush1.bf16.msra.mxu1 %v1840_v55  ;;  %v1800_v55 = vcombine.high %v502_v52, %v503_v53 }
  0x90   :  { %1058 = vmatprep.subr.bf16.mxu1 %v1843_v58  ;;  %v1799_v58 = vcombine.low %v502_v52, %v503_v53  ;;  %v1160_v52 = vld [vmem:[#allocation5 + $0x58] sm:$0xff] }
  0x91   :  { %v1161_v53 = vld [vmem:[#allocation5 + $0x78] sm:$0xff] }
  0x93   :  { %1059 = vmatpush1.bf16.msra.mxu1 %v1842_v59  ;;  %v1802_v59 = vcombine.high %v504_v56, %v505_v57 }
  0x94   :  { %1060 = vmatprep.subr.bf16.mxu1 %v1845_v62  ;;  %v1801_v62 = vcombine.low %v504_v56, %v505_v57  ;;  %v1868_v56 = vcombine.high %v1160_v52, %v1161_v53 }
  0x97   :  { %1061 = vmatpush1.bf16.msra.mxu1 %v1844_v63  ;;  %v1804_v63 = vcombine.high %v506_v60, %v507_v61 }
  0x98   :  { %1062 = vmatprep.subr.bf16.mxu1 %v1847_v2  ;;  %v1803_v2 = vcombine.low %v506_v60, %v507_v61  ;;  %v1867_v61 = vcombine.low %v1160_v52, %v1161_v53  ;;  %v1189_v52 = vld [vmem:[#allocation5 + $0x3f8] sm:$0xff] }
  0x9b   :  { %1063 = vmatpush1.bf16.msra.mxu1 %v1846_v3  ;;  %v1806_v3 = vcombine.high %v508_v0, %v509_v1 }
  0x9c   :  { %1064 = vmatprep.subr.bf16.mxu1 %v1849_v6  ;;  %v1805_v6 = vcombine.low %v508_v0, %v509_v1  ;;  %v1164_v0 = vld [vmem:[#allocation5 + $0xd8] sm:$0xff] }
  0x9d   :  { %v1165_v1 = vld [vmem:[#allocation5 + $0xf8] sm:$0xff] }
  0x9f   :  { %1065 = vmatpush1.bf16.msra.mxu1 %v1848_v7  ;;  %v1808_v7 = vcombine.high %v510_v4, %v511_v5 }
  0xa0   :  { %1066 = vmatprep.subr.bf16.mxu1 %v1851_v11  ;;  %v1810_v11 = vcombine.high %v512_v8, %v513_v9 }
  0xa3   :  { %1067 = vmatpush1.bf16.msra.mxu1 %v1850_v10  ;;  %v1807_v10 = vcombine.low %v510_v4, %v511_v5  ;;  %v1166_v4 = vld [vmem:[#allocation5 + $0x118] sm:$0xff] }
  0xa4   :  { %1068 = vmatprep.subr.bf16.mxu1 %v1853_v20  ;;  %v1809_v20 = vcombine.low %v512_v8, %v513_v9  ;;  %v1167_v5 = vld [vmem:[#allocation5 + $0x138] sm:$0xff] }
  0xa5   :  { %v1168_v8 = vld [vmem:[#allocation5 + $0x158] sm:$0xff] }
  0xa6   :  { %v1169_v9 = vld [vmem:[#allocation5 + $0x178] sm:$0xff] }
  0xa7   :  { %1069 = vmatpush1.bf16.msra.mxu1 %v1852_v21  ;;  %v1812_v21 = vcombine.high %v514_v12, %v515_v17 }
  0xa8   :  { %1070 = vmatprep.subr.bf16.mxu1 %v1855_v25  ;;  %v1814_v25 = vcombine.high %v516_v22, %v517_v23 }
  0xab   :  { %1071 = vmatpush1.bf16.msra.mxu1 %v1854_v24  ;;  %v1811_v24 = vcombine.low %v514_v12, %v515_v17  ;;  %v1171_v12 = vld [vmem:[#allocation5 + $0x1b8] sm:$0xff]  ;;  %v1875_v17 = vcombine.low %v1168_v8, %v1169_v9 }
  0xae   :  { %1073 = vmatmul.mubr.bf16.vlgmr.msra.gmra.mrb[4].mxu1 %v2319_v14 }
 0x100   :  { %v128_v27 = vpop.f32.mrb[0].mxu0 }
 0x101   :  { %v129_v28 = vadd.f32 %v1741_v26, %v128_v27  ;;  %v1951_v29 = vpop.f32.mrb[1].mxu0  ;;  %v519_v27 = vld [vmem:[#allocation5 + $0x3b0] sm:$0xff] }
 0x102   :  { %v131_v30 = vpop.f32.mrb[2].mxu0 }
 0x103   :  { %v132_v31 = vadd.f32 %v1741_v26, %v131_v30  ;;  %v1952_v32 = vpop.f32.mrb[3].mxu0  ;;  %v135_v35 = vmax.f32 %v129_v28, 0.0  ;;  %v518_v26 = vld [vmem:[#allocation5 + $0x390] sm:$0xff]  ;;  %v1813_v28 = vcombine.low %v516_v22, %v517_v23  ;;  %v1173_v22 = vld [vmem:[#allocation5 + $0x1f8] sm:$0xff] }
 0x104   :  { %v1816_v29 = vcombine.high %v518_v26, %v519_v27  ;;  %v520_v30 = vld [vmem:[#allocation5 + $0x3d0] sm:$0xff]  ;;  %v1815_v32 = vcombine.low %v518_v26, %v519_v27  ;;  %v1175_v26 = vld [vmem:[#allocation5 + $0x238] sm:$0xff] }
 0x105   :  { %v136_v36 = vmax.f32 %v132_v31, 0.0  ;;  %v521_v31 = vld [vmem:[#allocation5 + $0x3f0] sm:$0xff] }
 0x106   :  { %v1818_v33 = vcombine.high %v520_v30, %v521_v31 }
 0x107   :  { %v2337_v37 = vpack.c.bf16 %v136_v36, %v135_v35  ;;  %v523_v35 = vld [vmem:[#allocation5 + $0x430] sm:$0xff]  ;;  %v1817_v36 = vcombine.low %v520_v30, %v521_v31  ;;  %v1177_v30 = vld [vmem:[#allocation5 + $0x278] sm:$0xff] }
 0x109   :  { %1782 = vmatmul.mubr.msk.bf16.vlgmr.msra.gmra.mrb[4].mxu0 %vm376_vm2, %v2337_v37 }
 0x10a   :  { %719 = vmatpush1.bf16.msra.mxu0 %v1787_v18  ;;  %750 = vmatprep.mubr.bf16.mxu0 %v2314_v13  ;;  %v1798_v18 = vcombine.high %v500_v51, %v501_v15  ;;  %v1158_v51 = vld [vmem:[#allocation5 + $0x18] sm:$0xff] }
 0x10b   :  { %720 = vmatprep.subr.bf16.mxu0 %v1790_v38  ;;  %v1820_v38 = vcombine.high %v522_v34, %v523_v35  ;;  %v1159_v15 = vld [vmem:[#allocation5 + $0x38] sm:$0xff] }
 0x10e   :  { %721 = vmatpush1.bf16.msra.mxu0 %v1789_v41  ;;  %v1819_v41 = vcombine.low %v522_v34, %v523_v35  ;;  %v1179_v34 = vld [vmem:[#allocation5 + $0x2b8] sm:$0xff] }
 0x10f   :  { %722 = vmatprep.subr.bf16.mxu0 %v1792_v42  ;;  %v1822_v42 = vcombine.high %v524_v39, %v525_v40 }
 0x112   :  { %723 = vmatpush1.bf16.msra.mxu0 %v1791_v45  ;;  %v1821_v45 = vcombine.low %v524_v39, %v525_v40  ;;  %v1181_v39 = vld [vmem:[#allocation5 + $0x2f8] sm:$0xff] }
 0x113   :  { %724 = vmatprep.subr.bf16.mxu0 %v1794_v46  ;;  %v1857_v46 = vcombine.high %v844_v43, %v845_v44 }
 0x116   :  { %725 = vmatpush1.bf16.msra.mxu0 %v1793_v49  ;;  %v1856_v49 = vcombine.low %v844_v43, %v845_v44  ;;  %v1183_v43 = vld [vmem:[#allocation5 + $0x338] sm:$0xff] }
 0x117   :  { %726 = vmatprep.subr.bf16.mxu0 %v1796_v50  ;;  %v1859_v50 = vcombine.high %v846_v47, %v847_v48 }
 0x11a   :  { %727 = vmatpush1.bf16.msra.mxu0 %v1795_v16  ;;  %v1858_v16 = vcombine.low %v846_v47, %v847_v48  ;;  %v1185_v47 = vld [vmem:[#allocation5 + $0x378] sm:$0xff] }
 0x11b   :  { %728 = vmatprep.subr.bf16.mxu0 %v1798_v18  ;;  %v1866_v18 = vcombine.high %v1158_v51, %v1159_v15 }
 0x11e   :  { %729 = vmatpush1.bf16.msra.mxu0 %v1797_v54  ;;  %v1865_v54 = vcombine.low %v1158_v51, %v1159_v15  ;;  %v1187_v51 = vld [vmem:[#allocation5 + $0x3b8] sm:$0xff] }
 0x11f   :  { %730 = vmatprep.subr.bf16.mxu0 %v1800_v55 }
 0x122   :  { %731 = vmatpush1.bf16.msra.mxu0 %v1799_v58  ;;  %v1162_v58 = vld [vmem:[#allocation5 + $0x98] sm:$0xff] }
 0x123   :  { %732 = vmatprep.subr.bf16.mxu0 %v1802_v59  ;;  %v1163_v59 = vld [vmem:[#allocation5 + $0xb8] sm:$0xff] }
 0x126   :  { %733 = vmatpush1.bf16.msra.mxu0 %v1801_v62  ;;  %v1870_v62 = vcombine.high %v1162_v58, %v1163_v59 }
 0x127   :  { %734 = vmatprep.subr.bf16.mxu0 %v1804_v63 }
 0x12a   :  { %735 = vmatpush1.bf16.msra.mxu0 %v1803_v2  ;;  %v1869_v2 = vcombine.low %v1162_v58, %v1163_v59  ;;  %v1191_v58 = vld [vmem:[#allocation5 + $0x438] sm:$0xff] }
 0x12b   :  { %736 = vmatprep.subr.bf16.mxu0 %v1806_v3  ;;  %v1872_v3 = vcombine.high %v1164_v0, %v1165_v1 }
 0x12e   :  { %737 = vmatpush1.bf16.msra.mxu0 %v1805_v6  ;;  %v1871_v6 = vcombine.low %v1164_v0, %v1165_v1  ;;  %v1193_v0 = vld [vmem:[#allocation5 + $0x478] sm:$0xff] }
 0x12f   :  { %738 = vmatprep.subr.bf16.mxu0 %v1808_v7  ;;  %v1874_v7 = vcombine.high %v1166_v4, %v1167_v5 }
 0x132   :  { %739 = vmatpush1.bf16.msra.mxu0 %v1807_v10  ;;  %v1876_v10 = vcombine.high %v1168_v8, %v1169_v9  ;;  %v186_v8 = vlaneseq }
 0x133   :  { %740 = vmatprep.subr.bf16.mxu0 %v1810_v11  ;;  %v1170_v11 = vld [vmem:[#allocation5 + $0x198] sm:$0xff] }
 0x134   :  { %v1877_v23 = vcombine.low %v1170_v11, %v1171_v12  ;;  %v187_v9 = vshrl.u32 %v186_v8, 7 }
 0x136   :  { %741 = vmatpush1.bf16.msra.mxu0 %v1809_v20  ;;  %v1878_v20 = vcombine.high %v1170_v11, %v1171_v12 }
 0x137   :  { %742 = vmatprep.subr.bf16.mxu0 %v1812_v21  ;;  %v1172_v21 = vld [vmem:[#allocation5 + $0x1d8] sm:$0xff] }
 0x138   :  { %v1879_v27 = vcombine.low %v1172_v21, %v1173_v22 }
 0x13a   :  { %743 = vmatpush1.bf16.msra.mxu0 %v1811_v24  ;;  %v1880_v24 = vcombine.high %v1172_v21, %v1173_v22 }
 0x13b   :  { %744 = vmatprep.subr.bf16.mxu0 %v1814_v25  ;;  %v1174_v25 = vld [vmem:[#allocation5 + $0x218] sm:$0xff] }
 0x13c   :  { %v1881_v31 = vcombine.low %v1174_v25, %v1175_v26 }
 0x13e   :  { %745 = vmatpush1.bf16.msra.mxu0 %v1813_v28  ;;  %v1882_v28 = vcombine.high %v1174_v25, %v1175_v26 }
 0x13f   :  { %746 = vmatprep.subr.bf16.mxu0 %v1816_v29  ;;  %v1176_v29 = vld [vmem:[#allocation5 + $0x258] sm:$0xff] }
 0x140   :  { %v1883_v35 = vcombine.low %v1176_v29, %v1177_v30 }
 0x141   :  { %v2350_v55 = vpop.f32.mrb[0].mxu1 }
 0x142   :  { %747 = vmatpush1.bf16.msra.mxu0 %v1815_v32  ;;  %v2352_v57 = vpop.f32.mrb[1].mxu1  ;;  %v1884_v32 = vcombine.high %v1176_v29, %v1177_v30  ;;  %v2003_v29 = vld [vmem:[%s2507_s7 + $0x40] sm:$0xff]   ;;  %v2008_v30 = vld [vmem:[%s2507_s7 + $0x10] sm:$0xff]  }
 0x143   :  { %748 = vmatprep.subr.bf16.mxu0 %v1818_v33  ;;  %v2354_v60 = vpop.f32.mrb[2].mxu1  ;;  %v1178_v33 = vld [vmem:[#allocation5 + $0x298] sm:$0xff]  ;;  %1925 = vmatprep.subr.bf16.mxu1 %v2003_v29 }
 0x144   :  { %v2359_v63 = vpop.f32.mrb[3].mxu1  ;;  %v1885_v40 = vcombine.low %v1178_v33, %v1179_v34 }
 0x146   :  { %749 = vmatpush1.bf16.msra.mxu0 %v1817_v36  ;;  %v1886_v36 = vcombine.high %v1178_v33, %v1179_v34  ;;  %v2011_v33 = vld [vmem:[%s2507_s7 + $0x60] sm:$0xff]  }
 0x147   :  { %761 = vmatprep.subr.bf16.mxu0 %v1820_v38  ;;  %v1180_v38 = vld [vmem:[#allocation5 + $0x2d8] sm:$0xff]  ;;  %v2012_v34 = vld [vmem:[%s2507_s7 + $0x20] sm:$0xff]  }
 0x148   :  { %v1887_v44 = vcombine.low %v1180_v38, %v1181_v39 }
 0x149   :  { %751 = vmatmul.mubr.bf16.vlgmr.msra.gmra.mrb[8].mxu0 %v2319_v14 }
 0x14a   :  { %762 = vmatpush1.bf16.msra.mxu0 %v1819_v41  ;;  %793 = vmatprep.mubr.bf16.mxu0 %v2209_v19  ;;  %v1888_v41 = vcombine.high %v1180_v38, %v1181_v39  ;;  %v2014_v38 = vld [vmem:[%s2507_s7 + $0x28] sm:$0xff]  }
 0x14b   :  { %763 = vmatprep.subr.bf16.mxu0 %v1822_v42  ;;  %v1182_v42 = vld [vmem:[#allocation5 + $0x318] sm:$0xff] }
 0x14c   :  { %v1889_v48 = vcombine.low %v1182_v42, %v1183_v43 }
 0x14e   :  { %764 = vmatpush1.bf16.msra.mxu0 %v1821_v45  ;;  %v1890_v45 = vcombine.high %v1182_v42, %v1183_v43  ;;  %v2016_v43 = vld [vmem:[%s2507_s7 + $0x30] sm:$0xff]  }
 0x14f   :  { %1083 = vmatprep.subr.bf16.mxu0 %v1857_v46  ;;  %v1184_v46 = vld [vmem:[#allocation5 + $0x358] sm:$0xff] }
 0x150   :  { %v1891_v15 = vcombine.low %v1184_v46, %v1185_v47 }
 0x155   :  { %1823 = vmatmul.mubr.msk.bf16.vlgmr.msra.gmra.mrb[8].mxu0 %vm376_vm2, %v2337_v37 }
 0x156   :  { %1084 = vmatpush1.bf16.msra.mxu0 %v1856_v49  ;;  %1115 = vmatprep.mubr.bf16.mxu0 %v2209_v19  ;;  %v1892_v49 = vcombine.high %v1184_v46, %v1185_v47 }
 0x157   :  { %1085 = vmatprep.subr.bf16.mxu0 %v1859_v50  ;;  %v1186_v50 = vld [vmem:[#allocation5 + $0x398] sm:$0xff] }
 0x158   :  { %v1893_v53 = vcombine.low %v1186_v50, %v1187_v51 }
 0x15a   :  { %1086 = vmatpush1.bf16.msra.mxu0 %v1858_v16  ;;  %v1894_v16 = vcombine.high %v1186_v50, %v1187_v51 }
 0x15b   :  { %1386 = vmatprep.subr.bf16.mxu0 %v1866_v18  ;;  %v1188_v18 = vld [vmem:[#allocation5 + $0x3d8] sm:$0xff] }
 0x15c   :  { %v1895_v59 = vcombine.low %v1188_v18, %v1189_v52 }
 0x15d   :  { %1860 = vmatmul.mubr.msk.bf16.vlgmr.msra.gmra.mrb[12].mxu0 %vm376_vm2, %v2337_v37 }
 0x15e   :  { %1387 = vmatpush1.bf16.msra.mxu0 %v1865_v54  ;;  %1418 = vmatprep.mubr.bf16.mxu0 %v2314_v13  ;;  %v1873_v13 = vcombine.low %v1166_v4, %v1167_v5  ;;  %v1896_v54 = vcombine.high %v1188_v18, %v1189_v52 }
 0x15f   :  { %1388 = vmatprep.subr.bf16.mxu0 %v1868_v56  ;;  %v1190_v56 = vld [vmem:[#allocation5 + $0x418] sm:$0xff] }
 0x160   :  { %v1897_v1 = vcombine.low %v1190_v56, %v1191_v58 }
 0x162   :  { %1389 = vmatpush1.bf16.msra.mxu0 %v1867_v61  ;;  %v1898_v61 = vcombine.high %v1190_v56, %v1191_v58 }
 0x163   :  { %1390 = vmatprep.subr.bf16.mxu0 %v1870_v62  ;;  %v1192_v62 = vld [vmem:[#allocation5 + $0x458] sm:$0xff] }
 0x166   :  { %1391 = vmatpush1.bf16.msra.mxu0 %v1869_v2  ;;  %v1900_v2 = vcombine.high %v1192_v62, %v1193_v0 }
 0x167   :  { %1392 = vmatprep.subr.bf16.mxu0 %v1872_v3  ;;  %v1899_v3 = vcombine.low %v1192_v62, %v1193_v0 }
 0x16a   :  { %1393 = vmatpush1.bf16.msra.mxu0 %v1871_v6 }
 0x16b   :  { %1394 = vmatprep.subr.bf16.mxu0 %v1874_v7 }
 0x16e   :  { %1395 = vmatpush1.bf16.msra.mxu0 %v1873_v13  ;;  %v2378_v13 = vsub.s32 1, %v187_v9 }
 0x16f   :  { %1396 = vmatprep.subr.bf16.mxu0 %v1876_v10 }
 0x172   :  { %1397 = vmatpush1.bf16.msra.mxu0 %v1875_v17 }
 0x173   :  { %1398 = vmatprep.subr.bf16.mxu0 %v1878_v20 }
 0x176   :  { %1399 = vmatpush1.bf16.msra.mxu0 %v1877_v23 }
 0x177   :  { %1400 = vmatprep.subr.bf16.mxu0 %v1880_v24 }
 0x17a   :  { %1401 = vmatpush1.bf16.msra.mxu0 %v1879_v27 }
 0x17b   :  { %1402 = vmatprep.subr.bf16.mxu0 %v1882_v28 }
 0x17e   :  { %1403 = vmatpush1.bf16.msra.mxu0 %v1881_v31  ;;  %v2009_v31 = vld [vmem:[%s2507_s7 + $0x58] sm:$0xff]  }
 0x17f   :  { %1404 = vmatprep.subr.bf16.mxu0 %v1884_v32  ;;  %v2010_v32 = vld [vmem:[%s2507_s7 + $0x18] sm:$0xff]  }
 0x181   :  { %v2365_v4 = vpop.f32.mrb[4].mxu1 }
 0x182   :  { %1405 = vmatpush1.bf16.msra.mxu0 %v1883_v35  ;;  %v2367_v5 = vpop.f32.mrb[5].mxu1  ;;  %v2013_v35 = vld [vmem:[%s2507_s7 + $0x68] sm:$0xff]  }
 0x183   :  { %1406 = vmatprep.subr.bf16.mxu0 %v1886_v36  ;;  %v2369_v6 = vpop.f32.mrb[6].mxu1 }
 0x184   :  { %v2371_v7 = vpop.f32.mrb[7].mxu1 }
 0x186   :  { %1407 = vmatpush1.bf16.msra.mxu0 %v1885_v40  ;;  %v2015_v40 = vld [vmem:[%s2507_s7 + $0x70] sm:$0xff]  }
 0x187   :  { %1408 = vmatprep.subr.bf16.mxu0 %v1888_v41 }
 0x18a   :  { %1409 = vmatpush1.bf16.msra.mxu0 %v1887_v44  ;;  %v2017_v44 = vld [vmem:[%s2507_s7 + $0x78] sm:$0xff]  }
 0x18b   :  { %1410 = vmatprep.subr.bf16.mxu0 %v1890_v45  ;;  %v2018_v45 = vld [vmem:[%s2507_s7 + $0x38] sm:$0xff]  }
 0x18e   :  { %1411 = vmatpush1.bf16.msra.mxu0 %v1889_v48 }
 0x18f   :  { %1412 = vmatprep.subr.bf16.mxu0 %v1892_v49  ;;  %v526_v49 = vld [vmem:[%s2506_s6 + $0x4] sm:$0x3] }
 0x192   :  { %1413 = vmatpush1.bf16.msra.mxu0 %v1891_v15 }
 0x193   :  { %1414 = vmatprep.subr.bf16.mxu0 %v1894_v16 }
 0x196   :  { %1415 = vmatpush1.bf16.msra.mxu0 %v1893_v53  ;;  %v535_v53 = vrot.slane %v526_v49, %v2378_v13 }
 0x197   :  { %1416 = vmatprep.subr.bf16.mxu0 %v1896_v54  ;;  %v848_v54 = vld [vmem:[%s2506_s6 + $0x2] sm:$0x3] }
 0x19a   :  { %1417 = vmatpush1.bf16.msra.mxu0 %v1895_v59 }
 0x19b   :  { %1429 = vmatprep.subr.bf16.mxu0 %v1898_v61 }
 0x19d   :  { %1419 = vmatmul.mubr.bf16.vlgmr.msra.gmra.mrb[16].mxu0 %v2319_v14  ;;  %v2373_v14 = vsub.s32 0, %v187_v9 }
 0x19e   :  { %1430 = vmatpush1.bf16.msra.mxu0 %v1897_v1  ;;  %1461 = vmatprep.mubr.bf16.mxu0 %v2209_v19  ;;  %v184_v19 = vld [vmem:[%s2506_s6] sm:$0x3]  ;;  %v857_v1 = vrot.slane %v848_v54, %v2378_v13 }
 0x19f   :  { %1431 = vmatprep.subr.bf16.mxu0 %v1900_v2  ;;  %v193_v10 = vrot.slane %v184_v19, %v2378_v13  ;;  %v531_v18 = vrot.slane %v526_v49, %v2373_v14  ;;  %v853_v61 = vrot.slane %v848_v54, %v2373_v14 }
 0x1a1   :  { %v417_v12 = vadd.f32 %v2352_v57, %v193_v10  ;;  %v421_v21 = vadd.f32 %v2359_v63, %v193_v10  ;;  %v2005_v57 = vld [vmem:[%s2507_s7 + $0x48] sm:$0xff]   ;;  %v2007_v63 = vld [vmem:[%s2507_s7 + $0x50] sm:$0xff]   ;;  %v1075_v9 = vadd.f32 %v2365_v4, %v853_v61 }
 0x1a2   :  { %1432 = vmatpush1.bf16.msra.mxu0 %v1899_v3 }
 0x1a9   :  { %1901 = vmatmul.mubr.msk.bf16.vlgmr.msra.gmra.mrb[16].mxu0 %vm376_vm2, %v2337_v37  ;;  %v189_v37 = vrot.slane %v184_v19, %v2373_v14  ;;  %v1077_v19 = vadd.f32 %v2367_v5, %v857_v1 }
 0x1ab   :  { %v415_v11 = vadd.f32 %v2350_v55, %v189_v37  ;;  %v419_v17 = vadd.f32 %v2354_v60, %v189_v37  ;;  %v2004_v55 = vld [vmem:[%s2507_s7] sm:$0xff]   ;;  %v2006_v60 = vld [vmem:[%s2507_s7 + $0x8] sm:$0xff]   ;;  %v1079_v37 = vadd.f32 %v2369_v6, %v853_v61 }
 0x1ac   :  { %1926 = vmatpush3.bf16.msra.mxu1 %v2004_v55 }
 0x1ad   :  { %1927 = vmatprep.subr.bf16.mxu1 %v2005_v57 }
 0x1b0   :  { %1928 = vmatpush3.bf16.msra.mxu1 %v2006_v60 }
 0x1b1   :  { %1929 = vmatprep.subr.bf16.mxu1 %v2007_v63 }
 0x1b4   :  { %1930 = vmatpush3.bf16.msra.mxu1 %v2008_v30 }
 0x1b5   :  { %1931 = vmatprep.subr.bf16.mxu1 %v2009_v31 }
 0x1b8   :  { %1932 = vmatpush3.bf16.msra.mxu1 %v2010_v32 }
 0x1b9   :  { %1933 = vmatprep.subr.bf16.mxu1 %v2011_v33 }
 0x1bc   :  { %1934 = vmatpush3.bf16.msra.mxu1 %v2012_v34 }
 0x1bd   :  { %1935 = vmatprep.subr.bf16.mxu1 %v2013_v35 }
 0x1c0   :  { %1936 = vmatpush3.bf16.msra.mxu1 %v2014_v38 }
 0x1c1   :  { %1937 = vmatprep.subr.bf16.mxu1 %v2015_v40 }
 0x1c4   :  { %1938 = vmatpush3.bf16.msra.mxu1 %v2016_v43  ;;  %v67_v43 = vld [vmem:[#allocation2 + $0x8] sm:$0xff] }
 0x1c5   :  { %1939 = vmatprep.subr.bf16.mxu1 %v2017_v44 }
 0x1c8   :  { %1940 = vmatpush3.bf16.msra.mxu1 %v2018_v45  ;;  %v68_v45 = vld [vmem:[#allocation2 + $0x10] sm:$0xff] }
 0x1dc   :  { %v457_v20 = vpop.f32.mrb[4].mxu0 }
 0x1dd   :  { %v458_v22 = vadd.f32 %v457_v20, %v415_v11  ;;  %v459_v23 = vpop.f32.mrb[5].mxu0  ;;  %v1081_v11 = vadd.f32 %v2371_v7, %v857_v1 }
 0x1de   :  { %v460_v24 = vadd.f32 %v459_v23, %v417_v12  ;;  %v461_v25 = vpop.f32.mrb[6].mxu0 }
 0x1df   :  { %v462_v26 = vadd.f32 %v461_v25, %v419_v17  ;;  %v463_v27 = vpop.f32.mrb[7].mxu0  ;;  %v1783_v36 = vmul.f32 -1.442695, %v458_v22 }
 0x1e0   :  { %v464_v28 = vadd.f32 %v463_v27, %v421_v21  ;;  %v1784_v39 = vmul.f32 -1.442695, %v460_v24 }
 0x1e1   :  { %v1785_v41 = vmul.f32 -1.442695, %v462_v26  ;;  %2019 = vpow2.f32 %v1783_v36 }
 0x1e2   :  { %v1786_v42 = vmul.f32 -1.442695, %v464_v28  ;;  %2021 = vpow2.f32 %v1784_v39 }
 0x1e3   :  { %2023 = vpow2.f32 %v1785_v41 }
 0x1e4   :  { %2025 = vpow2.f32 %v1786_v42  ;;  %v66_v42 = vld [vmem:[#allocation2] sm:$0xff] }
 0x1eb   :  { %v2020_v46 = vpop.eup %2019 }
 0x1ec   :  { %v2022_v47 = vpop.eup %2021  ;;  %v478_v51 = vadd.f32 1.0, %v2020_v46 }
 0x1ed   :  { %v2024_v48 = vpop.eup %2023  ;;  %v479_v15 = vadd.f32 1.0, %v2022_v47 }
 0x1ee   :  { %v2026_v50 = vpop.eup %2025  ;;  %v480_v16 = vadd.f32 1.0, %v2024_v48  ;;  %2027 = vrcp.f32 %v478_v51  ;;  %v69_v48 = vld [vmem:[#allocation2 + $0x18] sm:$0xff] }
 0x1ef   :  { %v481_v52 = vadd.f32 1.0, %v2026_v50  ;;  %2029 = vrcp.f32 %v479_v15 }
 0x1f0   :  { %2031 = vrcp.f32 %v480_v16 }
 0x1f1   :  { %2033 = vrcp.f32 %v481_v52 }
 0x1f8   :  { %v2028_v12 = vpop.eup %2027 }
 0x1f9   :  { %v2030_v21 = vpop.eup %2029 }
 0x1fa   :  { %v2032_v24 = vpop.eup %2031 }
 0x1fb   :  { %v2034_v28 = vpop.eup %2033 }
 0x228   :  { %v795_v56 = vpop.f32.mrb[8].mxu0 }
 0x229   :  { %v1961_v58 = vadd.f32 %v795_v56, %v531_v18  ;;  %v797_v59 = vpop.f32.mrb[9].mxu0  ;;  %v1194_v56 = vld [vmem:[%s2506_s6 + $0x6] sm:$0x3]  ;;  %s2210_s6 = smov [#allocation8]  }
 0x22a   :  { %v1962_v62 = vadd.f32 %v797_v59, %v535_v53  ;;  %v799_v0 = vpop.f32.mrb[10].mxu0  ;;  %v1203_v59 = vrot.slane %v1194_v56, %v2378_v13  ;;  %s1709_s14 = sshll.u32 %s2210_s6, 4  ;;  %s1710_s14 = int_to_ptr.vmem [resolvable:$true] %s1709_s14 }
 0x22b   :  { %2035 = vtanh.f32 %v1961_v58  ;;  %v1963_v2 = vadd.f32 %v799_v0, %v531_v18  ;;  %v801_v3 = vpop.f32.mrb[11].mxu0  ;;  %v1199_v58 = vrot.slane %v1194_v56, %v2373_v14  ;;  %s2127_s0 = scalar_lea.vmem %s1710_s14, 512  ;;  %p2132_p3 = scmp.lt.s32.totalorder %s1710_s14, %s1710_s14 }
 0x22c   :  { %2037 = vtanh.f32 %v1962_v62  ;;  %v1964_v8 = vadd.f32 %v801_v3, %v535_v53  ;;  %p2128_p2 = scmp.ne.s32.totalorder %s1710_s14, %s2127_s0  ;;  %p2133_p4 = scmp.lt.s32.totalorder %s2127_s0, %s2127_s0 }
 0x22d   :  { %2039 = vtanh.f32 %v1963_v2 }
 0x22e   :  { %2041 = vtanh.f32 %v1964_v8  ;;  %p2134_p5 = por %p2133_p4, %p2132_p3 }
 0x230   :  { %v1117_v10 = vpop.f32.mrb[12].mxu0  ;;  %p2135_p6 = pnand %p2134_p5, %p2128_p2 }
 0x231   :  { %v1118_v17 = vadd.f32 %v1117_v10, %v1075_v9  ;;  %v1119_v20 = vpop.f32.mrb[13].mxu0 }
 0x232   :  { %v1120_v22 = vadd.f32 %v1119_v20, %v1077_v19  ;;  %v1121_v23 = vpop.f32.mrb[14].mxu0 }
 0x233   :  { %v1861_v25 = vmul.f32 -1.442695, %v1118_v17  ;;  %v1122_v26 = vadd.f32 %v1121_v23, %v1079_v37  ;;  %v1123_v27 = vpop.f32.mrb[15].mxu0 }
 0x234   :  { %v1862_v4 = vmul.f32 -1.442695, %v1120_v22  ;;  %v1124_v29 = vadd.f32 %v1123_v27, %v1081_v11 }
 0x235   :  { %v2036_v55 = vpop.eup %2035  ;;  %2043 = vpow2.f32 %v1861_v25  ;;  %v1863_v5 = vmul.f32 -1.442695, %v1122_v26 }
 0x236   :  { %v2038_v6 = vpop.eup %2037  ;;  %v808_v57 = vmul.f32 %v2036_v55, %v2028_v12  ;;  %2045 = vpow2.f32 %v1862_v4  ;;  %v1864_v7 = vmul.f32 -1.442695, %v1124_v29 }
 0x237   :  { %v2040_v60 = vpop.eup %2039  ;;  %v809_v63 = vmul.f32 %v2038_v6, %v2030_v21  ;;  %2047 = vpow2.f32 %v1863_v5 }
 0x238   :  { %v2042_v30 = vpop.eup %2041  ;;  %v810_v31 = vmul.f32 %v2040_v60, %v2032_v24  ;;  %2049 = vpow2.f32 %v1864_v7 }
 0x239   :  { %v811_v32 = vmul.f32 %v2042_v30, %v2034_v28 }
 0x23f   :  { %v2044_v33 = vpop.eup %2043 }
 0x240   :  { %v2046_v34 = vpop.eup %2045  ;;  %v1138_v35 = vadd.f32 1.0, %v2044_v33 }
 0x241   :  { %v2048_v36 = vpop.eup %2047  ;;  %v1139_v38 = vadd.f32 1.0, %v2046_v34 }
 0x242   :  { %v2050_v39 = vpop.eup %2049  ;;  %2051 = vrcp.f32 %v1138_v35  ;;  %v1140_v40 = vadd.f32 1.0, %v2048_v36 }
 0x243   :  { %2053 = vrcp.f32 %v1139_v38  ;;  %v1141_v41 = vadd.f32 1.0, %v2050_v39 }
 0x244   :  { %2055 = vrcp.f32 %v1140_v40 }
 0x245   :  { %2057 = vrcp.f32 %v1141_v41 }
 0x24c   :  { %v2052_v44 = vpop.eup %2051 }
 0x24d   :  { %v2054_v46 = vpop.eup %2053  ;;  %v1150_v47 = vmul.f32 %v2052_v44, %v66_v42 }
 0x24e   :  { %v2056_v49 = vpop.eup %2055  ;;  %v1151_v50 = vmul.f32 %v2054_v46, %v67_v43 }
 0x24f   :  { %v2058_v51 = vpop.eup %2057  ;;  %v1154_v15 = vadd.f32 %v1150_v47, %v808_v57  ;;  %v1152_v16 = vmul.f32 %v2056_v49, %v68_v45 }
 0x250   :  { %v1155_v18 = vadd.f32 %v1151_v50, %v809_v63  ;;  %v1153_v52 = vmul.f32 %v2058_v51, %v69_v48 }
 0x251   :  { %1504 = vst [vmem:[#allocation10] sm:$0xff] %v1154_v15  ;;  %v1156_v53 = vadd.f32 %v1152_v16, %v810_v31 }
 0x252   :  { %1505 = vst [vmem:[#allocation10 + $0x8] sm:$0xff] %v1155_v18  ;;  %v1157_v54 = vadd.f32 %v1153_v52, %v811_v32 }
 0x253   :  { %1506 = vst [vmem:[#allocation10 + $0x10] sm:$0xff] %v1156_v53 }
 0x254   :  { %1507 = vst [vmem:[#allocation10 + $0x18] sm:$0xff] %v1157_v54 }
 0x27c   :  { %v1463_v61 = vpop.f32.mrb[16].mxu0 }
 0x27d   :  { %v1973_v62 = vadd.f32 %v1463_v61, %v1199_v58  ;;  %v1465_v0 = vpop.f32.mrb[17].mxu0 }
 0x27e   :  { %v1974_v1 = vadd.f32 %v1465_v0, %v1203_v59  ;;  %v1467_v2 = vpop.f32.mrb[18].mxu0 }
 0x27f   :  { %v1902_v3 = vmul.f32 -1.442695, %v1973_v62  ;;  %v1975_v8 = vadd.f32 %v1467_v2, %v1199_v58  ;;  %v1469_v9 = vpop.f32.mrb[19].mxu0 }
 0x280   :  { %v1903_v19 = vmul.f32 -1.442695, %v1974_v1  ;;  %v1976_v37 = vadd.f32 %v1469_v9, %v1203_v59 }
 0x281   :  { %2059 = vpow2.f32 %v1902_v3  ;;  %v1904_v10 = vmul.f32 -1.442695, %v1975_v8 }
 0x282   :  { %2061 = vpow2.f32 %v1903_v19  ;;  %v1905_v11 = vmul.f32 -1.442695, %v1976_v37 }
 0x283   :  { %2063 = vpow2.f32 %v1904_v10 }
 0x284   :  { %2065 = vpow2.f32 %v1905_v11 }
 0x285   :  { %2067 = vtanh.f32 %v1154_v15 }
 0x286   :  { %2069 = vtanh.f32 %v1155_v18 }
 0x287   :  { %2071 = vtanh.f32 %v1156_v53 }
 0x288   :  { %2073 = vtanh.f32 %v1157_v54 }
 0x28b   :  { %v2060_v14 = vpop.eup %2059 }
 0x28c   :  { %v2062_v13 = vpop.eup %2061  ;;  %v1484_v12 = vadd.f32 1.0, %v2060_v14 }
 0x28d   :  { %v2064_v17 = vpop.eup %2063  ;;  %v1485_v20 = vadd.f32 1.0, %v2062_v13 }
 0x28e   :  { %v2066_v21 = vpop.eup %2065  ;;  %2075 = vrcp.f32 %v1484_v12  ;;  %v1486_v22 = vadd.f32 1.0, %v2064_v17 }
 0x28f   :  { %2077 = vrcp.f32 %v1485_v20  ;;  %v1487_v23 = vadd.f32 1.0, %v2066_v21  ;;  %v2068_v24 = vpop.eup %2067 }
 0x290   :  { %2079 = vrcp.f32 %v1486_v22  ;;  %v2070_v25 = vpop.eup %2069 }
 0x291   :  { %2081 = vrcp.f32 %v1487_v23  ;;  %v2072_v26 = vpop.eup %2071 }
 0x292   :  { %v2074_v27 = vpop.eup %2073 }
 0x298   :  { %v2076_v28 = vpop.eup %2075 }
 0x299   :  { %v2078_v4 = vpop.eup %2077  ;;  %v1500_v29 = vmul.f32 %v2076_v28, %v2068_v24 }
 0x29a   :  { %v2080_v55 = vpop.eup %2079  ;;  %v1501_v5 = vmul.f32 %v2078_v4, %v2070_v25 }
 0x29b   :  { %v2082_v6 = vpop.eup %2081  ;;  %v1502_v57 = vmul.f32 %v2080_v55, %v2072_v26  ;;  %1508 = vst [vmem:[#allocation8] sm:$0xff] %v1500_v29 }
 0x29c   :  { %v1503_v7 = vmul.f32 %v2082_v6, %v2074_v27  ;;  %1509 = vst [vmem:[#allocation8 + $0x8] sm:$0xff] %v1501_v5 }
 0x29d   :  { %v1512_v60 = vpack.c.bf16 %v1502_v57, %v1500_v29  ;;  %1510 = vst [vmem:[#allocation8 + $0x10] sm:$0xff] %v1502_v57 }
 0x29e   :  { %1511 = vst [vmem:[#allocation8 + $0x18] sm:$0xff] %v1503_v7  ;;  %v1513_v63 = vpack.c.bf16 %v1503_v7, %v1501_v5 }
 0x2a0   :  { %1681 = vmatprep.mubr.bf16.mxu1 %v1513_v63 }
 0x2a1   :  { %1682 = vmatmul.mubr.bf16.vlgmr.msra.gmra.mrb[8].mxu1 %v1512_v60 }
 0x2a2   :  { %2138 = shalt.err (!%p2135_p6)
}
 0x2a3   :  { %s2139_s13 = scalar_lea.hbm %s2510_s10, 512 }
 0x2a4   :  { %p2140_p7 = scmp.ne.s32.totalorder %s2510_s10, %s2139_s13  ;;  %p2143_p8 = scmp.lt.u32.totalorder %s2139_s13, %s2510_s10 }
 0x2a6   :  { %p2145_p9 = pnand %p2143_p8, %p2140_p7 }
 0x2a8   :  { %2148 = shalt.err (!%p2145_p9)
}
 0x2a9   :  { %1715 = dma.vmem_to_hbm [thread:$0]  %s1710_s14, 512, %s2510_s10, [#allocation9], %s2202_s27, %s2202_s27, %s2203_s28  }
 0x2aa   :  { %s2211_s20 = smov [#allocation10]  }
 0x2ab   :  { %s1721_s21 = sshll.u32 %s2211_s20, 4  ;;  %s1722_s21 = int_to_ptr.vmem [resolvable:$true] %s1721_s21 }
 0x2ac   :  { %s2149_s22 = scalar_lea.vmem %s1722_s21, 512  ;;  %p2154_p11 = scmp.lt.s32.totalorder %s1722_s21, %s1722_s21 }
 0x2ad   :  { %p2150_p10 = scmp.ne.s32.totalorder %s1722_s21, %s2149_s22  ;;  %p2155_p12 = scmp.lt.s32.totalorder %s2149_s22, %s2149_s22 }
 0x2af   :  { %p2156_p13 = por %p2155_p12, %p2154_p11 }
 0x2b1   :  { %p2157_p0 = pnand %p2156_p13, %p2150_p10 }
 0x2b3   :  { %2160 = shalt.err (!%p2157_p0)
}
 0x2b4   :  { %s2161_s23 = scalar_lea.hbm %s2511_s11, 512 }
 0x2b5   :  { %p2162_p1 = scmp.ne.s32.totalorder %s2511_s11, %s2161_s23  ;;  %p2165_p2 = scmp.lt.u32.totalorder %s2161_s23, %s2511_s11 }
 0x2b7   :  { %p2167_p3 = pnand %p2165_p2, %p2162_p1 }
 0x2b9   :  { %2170 = shalt.err (!%p2167_p3)
}
 0x2ba   :  { %1727 = dma.vmem_to_hbm [thread:$0]  %s1722_s21, 512, %s2511_s11, [#allocation9], %s2202_s27, %s2202_s27, %s2203_s28  }
 0x2bb   :  { %v1906_v31 = vld [vmem:[%s2508_s8] ss:$0 sm:$0xff]  ;;  %s2212_s6 = smov [#allocation7]  }
 0x2bc   :  { %s1697_s14 = sshll.u32 %s2212_s6, 4  ;;  %s1698_s14 = int_to_ptr.vmem [resolvable:$true] %s1697_s14 }
 0x2bd   :  { %s2171_s11 = scalar_lea.vmem %s1698_s14, 256  ;;  %p2176_p5 = scmp.lt.s32.totalorder %s1698_s14, %s1698_s14 }
 0x2be   :  { %p2172_p4 = scmp.ne.s32.totalorder %s1698_s14, %s2171_s11  ;;  %p2177_p6 = scmp.lt.s32.totalorder %s2171_s11, %s2171_s11 }
 0x2c0   :  { %p2178_p7 = por %p2177_p6, %p2176_p5 }
 0x2c2   :  { %p2179_p8 = pnand %p2178_p7, %p2172_p4 }
 0x374   :  { %v1941_v30 = vpop.f32.mrb[8].mxu1 }
 0x375   :  { %v1942_v32 = vpop.f32.mrb[9].mxu1 }
 0x376   :  { %v1943_v33 = vadd.f32 %v1942_v32, %v1941_v30  ;;  %v1944_v34 = vpop.f32.mrb[10].mxu1 }
 0x377   :  { %v1945_v35 = vpop.f32.mrb[11].mxu1 }
 0x378   :  { %v1684_v36 = vadd.f32 %v1943_v33, %v1906_v31  ;;  %v1946_v38 = vadd.f32 %v1945_v35, %v1944_v34 }
 0x37a   :  { %1690 = vst.msk [vmem:[#allocation7] sm:$0xff] %vm376_vm2, %v1684_v36  ;;  %v1687_v39 = vadd.f32 %v1946_v38, %v1906_v31 }
 0x37c   :  { %1691 = vst.msk [vmem:[#allocation7 + $0x8] sm:$0xff] %vm376_vm2, %v1687_v39 }
 0x37d   :  { %2182 = shalt.err (!%p2179_p8)
}
 0x37e   :  { %s2183_s28 = scalar_lea.hbm %s2509_s9, 256 }
 0x37f   :  { %p2184_p9 = scmp.ne.s32.totalorder %s2509_s9, %s2183_s28  ;;  %p2187_p10 = scmp.lt.u32.totalorder %s2183_s28, %s2509_s9 }
 0x381   :  { %p2189_p11 = pnand %p2187_p10, %p2184_p9 }
 0x383   :  { %2192 = shalt.err (!%p2189_p11)
}
 0x384   :  { %s2213_s1 = smov 128   ;;  %s2214_s15 = smov 8  }
 0x385   :  { %1703 = dma.vmem_to_hbm [thread:$0]  %s1698_s14, 256, %s2509_s9, [#allocation4], %s2213_s1, %s2213_s1, %s2214_s15  }
 0x386   :  { %2197 = dma.done.wait [#allocation4], 256  }
 0x387   :  { %2198 = vsyncadd [#allocation4], 4294967040 }
 0x388   :  { %2199 = dma.done.wait [#allocation9], 1024  }
 0x389   :  { %2200 = vsyncadd [#allocation9], 4294966272 }
 0x38a   :  { %1737 = vsyncpa [#allocation3], 1 }
 0x38b   :  { %1738 = vsyncpa [#allocation6], 1 }
 0x38c   :  { %1739 = vsyncpa [#allocation4], 1 }
 0x38d   :  { %1740 = vsyncpa [#allocation9], 1 }

</bundles_post_ra>
